<compile_context>
chip_gen: v7x
topology: tpu7x:2x2x1
jax: 0.10.0
libtpu: 0.0.40
codegen_flags: <defaults>
</compile_context>

<pallas_src>
import functools

import numpy as np
import jax
import jax.numpy as jnp
from jax import lax
from jax.experimental import pallas as pl
from jax.experimental.pallas import tpu as pltpu

EPS = 1e-5    # PyTorch BatchNorm2d default eps
LANE = 128    # TPU vreg lane width
SUB = 8       # TPU vreg sublane width (f32)


def _round_up(v, m):
    return (v + m - 1) // m * m


# --------------------------------------------------------------------------- host-side
# trace-time constant builders (tiny numpy tables).

def _tap_masks_np(n, h, w, k, hwp):
    """(k*k, n*hwp): mask[t, img*hwp + oh*w + ow] = 1 iff tap t's source pixel for
    output (oh, ow) lies inside the image; 0 elsewhere (incl. lane-pad region)."""
    pad = k // 2
    oh, ow = np.meshgrid(np.arange(h), np.arange(w), indexing="ij")
    m = np.zeros((k * k, hwp), np.float32)
    for kh in range(k):
        for kw in range(k):
            iy, ix = oh + kh - pad, ow + kw - pad
            valid = (iy >= 0) & (iy < h) & (ix >= 0) & (ix < w)
            m[kh * k + kw, : h * w] = valid.reshape(-1)
    return np.tile(m, (1, n))


def _valid_np(n, hw, hwp):
    """(1, n*hwp): 1 on real output pixels, 0 on the per-image lane padding."""
    v = np.zeros((1, hwp), np.float32)
    v[0, :hw] = 1.0
    return np.tile(v, (1, n))


def _maxpool_select_np(n, h, w, hwp_in, hwp_out):
    """4 phase-gather 0/1 matrices (n*hwp_in, n*hwp_out) for 2x2/stride-2 max pooling."""
    h2, w2 = h // 2, w // 2
    sel = np.zeros((4, n * hwp_in, n * hwp_out), np.float32)
    for a in range(2):
        for b in range(2):
            ph = 2 * a + b
            for img in range(n):
                for i in range(h2):
                    for j in range(w2):
                        src = img * hwp_in + (2 * i + a) * w + (2 * j + b)
                        dst = img * hwp_out + i * w2 + j
                        sel[ph, src, dst] = 1.0
    return sel


def _upsample_select_np(n, h, w, hwp_in, hwp_out):
    """0/1 matrix (1, n*hwp_in, n*hwp_out): nearest-neighbour x2 upsample scatter."""
    sel = np.zeros((1, n * hwp_in, n * hwp_out), np.float32)
    for img in range(n):
        for i in range(h):
            for j in range(w):
                src = img * hwp_in + i * w + j
                for a in range(2):
                    for b in range(2):
                        dst = img * hwp_out + (2 * i + a) * (2 * w) + (2 * j + b)
                        sel[0, src, dst] = 1.0
    return sel


# ------------------------------------------------------------------------------ kernel

def _stage_kernel(*refs, k, width, l_in, pool, up, bn, count_out):
    """One fused BaseModel stage.

    ref order: x, w, bias, masks, [resamp], [gamma, beta, valid_out], out
      x         (cin_p, l_in)      f32  channel rows, flat per-image spatial in lanes
      w         (8, k*k*cin_p)     f32  conv weights, im2col column order
      bias      (8, 1)             f32
      masks     (k*k, l_in)        f32  per-tap "source pixel inside image" masks
      resamp    (P, l_in, l_out)   f32  0/1 pool (P=4) / upsample (P=1) matrices
      gamma/beta(8, 1)             f32
      valid_out (1, l_out)         f32  "output pixel is real" mask
      out       (8, l_out)         f32
    """
    refs = list(refs)
    out_ref = refs.pop()
    x_ref, w_ref, bias_ref, mask_ref = refs[:4]
    pos = 4
    if pool or up:
        resamp_ref = refs[pos]
        pos += 1
    if bn:
        gamma_ref, beta_ref, vout_ref = refs[pos:pos + 3]

    pad = k // 2
    x = x_ref[...]                                        # (cin_p, l_in)
    masks = mask_ref[...]                                 # (k*k, l_in)
    valid_in = masks[pad * k + pad:pad * k + pad + 1, :]  # centre tap == in-image mask

    # --- im2col rows: static XLU lane-rolls + per-tap boundary masks.  The masks zero
    #     every wrapped / out-of-image lane, so roll is semantics-preserving.  [rev #1]
    rows = []
    for kh in range(k):
        for kw in range(k):
            t = kh * k + kw
            d = (kh - pad) * width + (kw - pad)           # flat source offset in image
            shifted = x if d == 0 else pltpu.roll(x, shift=(-d) % l_in, axis=1)
            rows.append(shifted * masks[t:t + 1, :])
    b_mat = jnp.concatenate(rows, axis=0)                 # (k*k*cin_p, l_in), 8-aligned

    # --- conv = ONE MXU matmul over the whole (tap, cin) contraction.       [rev #2,#4]
    acc = jnp.dot(w_ref[...], b_mat, preferred_element_type=jnp.float32)   # (8, l_in)
    acc = acc + bias_ref[...] * valid_in                  # bias only on real pixels

    # --- optional spatial resampling, kept lane-dense via 0/1 MXU matmuls.    [rev #8]
    if pool:
        p0 = jnp.dot(acc, resamp_ref[0], preferred_element_type=jnp.float32)
        p1 = jnp.dot(acc, resamp_ref[1], preferred_element_type=jnp.float32)
        p2 = jnp.dot(acc, resamp_ref[2], preferred_element_type=jnp.float32)
        p3 = jnp.dot(acc, resamp_ref[3], preferred_element_type=jnp.float32)
        res = jnp.maximum(jnp.maximum(p0, p1), jnp.maximum(p2, p3))
    elif up:
        res = jnp.dot(acc, resamp_ref[0], preferred_element_type=jnp.float32)
    else:
        res = acc                                         # l_out == l_in

    # --- training-mode BatchNorm (batch stats over N*H_out*W_out) + ReLU, vectorized
    #     over the whole (Cout_blk, l_out) slab; single lane-dense store.      [rev #3]
    if bn:
        inv_cnt = 1.0 / count_out
        mean = jnp.sum(res, axis=1, keepdims=True) * inv_cnt            # (8, 1)
        cen = (res - mean) * vout_ref[...]                              # zero pad lanes
        var = jnp.sum(cen * cen, axis=1, keepdims=True) * inv_cnt       # biased, PyTorch
        scale = gamma_ref[...] * lax.rsqrt(var + EPS)
        shift = beta_ref[...] - mean * scale
        out_ref[...] = jnp.maximum(res * scale + shift, 0.0)
    else:
        out_ref[...] = res


# ----------------------------------------------------------------------------- wrapper

def fused_stage(x_slab, wconv, bias, gamma=None, beta=None, *,
                n, h, w, pool=False, up=False, bn=True):
    """Run one fused stage on a packed activation slab.

    x_slab: (round_up(cin,8), n * round_up(h*w,128)) f32.  Returns
    (out_slab, h_out, w_out) with out_slab: (round_up(cout,8), n * round_up(hw_out,128)).
    Pad-lane / pad-channel contents are never read meaningfully downstream.
    """
    assert not (pool and up)
    cout, cin, kh_, kw_ = wconv.shape
    assert kh_ == kw_ and kh_ % 2 == 1, "odd square kernels only"
    k = kh_
    cin_p, cout_p = _round_up(cin, SUB), _round_up(cout, SUB)
    hw = h * w
    hwp_in = _round_up(hw, LANE)
    l_in = n * hwp_in
    assert x_slab.shape == (cin_p, l_in), (x_slab.shape, (cin_p, l_in))

    if pool:
        h_out, w_out = h // 2, w // 2
    elif up:
        h_out, w_out = 2 * h, 2 * w
    else:
        h_out, w_out = h, w
    hw_out = h_out * w_out
    hwp_out = _round_up(hw_out, LANE)
    l_out = n * hwp_out

    # conv weights in im2col column order, zero-padded to (cout_p, k*k*cin_p); VMEM.
    wt = jnp.transpose(wconv.astype(jnp.float32), (0, 2, 3, 1))       # (cout, k, k, cin)
    wt = jnp.pad(wt, ((0, cout_p - cout), (0, 0), (0, 0), (0, cin_p - cin)))
    w_mat = wt.reshape(cout_p, k * k * cin_p)
    b_col = jnp.pad(bias.astype(jnp.float32).reshape(cout, 1),
                    ((0, cout_p - cout), (0, 0)))
    masks = jnp.asarray(_tap_masks_np(n, h, w, k, hwp_in))

    cout_blk = SUB                       # one sublane tile of output channels per step
    nblk = cout_p // cout_blk

    args = [x_slab, w_mat, b_col, masks]
    in_specs = [
        pl.BlockSpec((cin_p, l_in), lambda i: (0, 0)),        # input slab stays resident
        pl.BlockSpec((cout_blk, k * k * cin_p), lambda i: (i, 0)),
        pl.BlockSpec((cout_blk, 1), lambda i: (i, 0)),
        pl.BlockSpec((k * k, l_in), lambda i: (0, 0)),
    ]
    if pool:
        args.append(jnp.asarray(_maxpool_select_np(n, h, w, hwp_in, hwp_out)))
        in_specs.append(pl.BlockSpec((4, l_in, l_out), lambda i: (0, 0, 0)))
    elif up:
        args.append(jnp.asarray(_upsample_select_np(n, h, w, hwp_in, hwp_out)))
        in_specs.append(pl.BlockSpec((1, l_in, l_out), lambda i: (0, 0, 0)))
    if bn:
        gamma_p = jnp.pad(gamma.astype(jnp.float32).reshape(cout, 1),
                          ((0, cout_p - cout), (0, 0)), constant_values=1.0)
        beta_p = jnp.pad(beta.astype(jnp.float32).reshape(cout, 1),
                         ((0, cout_p - cout), (0, 0)))
        args += [gamma_p, beta_p, jnp.asarray(_valid_np(n, hw_out, hwp_out))]
        in_specs += [
            pl.BlockSpec((cout_blk, 1), lambda i: (i, 0)),
            pl.BlockSpec((cout_blk, 1), lambda i: (i, 0)),
            pl.BlockSpec((1, l_out), lambda i: (0, 0)),
        ]

    kernel = functools.partial(_stage_kernel, k=k, width=w, l_in=l_in,
                               pool=pool, up=up, bn=bn, count_out=n * hw_out)

    out_slab = pl.pallas_call(
        kernel,
        out_shape=jax.ShapeDtypeStruct((cout_p, l_out), jnp.float32),
        grid=(nblk,),
        in_specs=in_specs,
        out_specs=pl.BlockSpec((cout_blk, l_out), lambda i: (i, 0)),
        compiler_params=pltpu.CompilerParams(
            dimension_semantics=("parallel",),            # per-channel BN -> independent
            vmem_limit_bytes=32 * 1024 * 1024,
        ),
    )(*args)
    return out_slab, h_out, w_out


# ------------------------------------------------------------------------ full forward

def _pack_nchw(x, n, c, h, w):
    hwp = _round_up(h * w, LANE)
    c_p = _round_up(c, SUB)
    s = jnp.transpose(x.astype(jnp.float32), (1, 0, 2, 3)).reshape(c, n, h * w)
    s = jnp.pad(s, ((0, c_p - c), (0, 0), (0, hwp - h * w)))
    return s.reshape(c_p, n * hwp)


def _unpack_nchw(slab, n, c, h, w):
    hwp = _round_up(h * w, LANE)
    s = slab[:c].reshape(c, n, hwp)[:, :, : h * w]
    return jnp.transpose(s, (1, 0, 2)).reshape(n, c, h, w)


def base_model_forward(x, params):
    """Pallas forward pass of BaseModel: 6 fused stage kernels on packed slabs."""
    n, cin, h, w = x.shape
    s = _pack_nchw(x, n, cin, h, w)

    s, h, w = fused_stage(s, *params["down1"], n=n, h=h, w=w, pool=True)
    s, h, w = fused_stage(s, *params["down2"], n=n, h=h, w=w, pool=True)
    s, h, w = fused_stage(s, *params["bottleneck"], n=n, h=h, w=w)
    s, h, w = fused_stage(s, *params["up1"], n=n, h=h, w=w, up=True)
    s, h, w = fused_stage(s, *params["up2"], n=n, h=h, w=w, up=True)
    w_last, b_last = params["last"]
    s, h, w = fused_stage(s, w_last, b_last, n=n, h=h, w=w, bn=False)

    return _unpack_nchw(s, n, w_last.shape[0], h, w)


# ---------------------------------------------------------------------------- reference

def base_model_reference(x, params, k):
    """Pure-JAX forward matching PyTorch BaseModel semantics (training-mode BN)."""
    pad = k // 2

    def conv(y, wgt, b):
        y = lax.conv_general_dilated(
            y.astype(jnp.float32), wgt.astype(jnp.float32), (1, 1),
            ((pad, pad), (pad, pad)), dimension_numbers=("NCHW", "OIHW", "NCHW"),
            precision=lax.Precision.HIGHEST)
        return y + b.reshape(1, -1, 1, 1)

    def bn_relu(y, g, be):
        mean = jnp.mean(y, axis=(0, 2, 3), keepdims=True)
        var = jnp.mean((y - mean) ** 2, axis=(0, 2, 3), keepdims=True)
        y = (y - mean) * lax.rsqrt(var + EPS)
        return jnp.maximum(y * g.reshape(1, -1, 1, 1) + be.reshape(1, -1, 1, 1), 0.0)

    def pool2(y):
        return lax.reduce_window(y, -jnp.inf, lax.max, (1, 1, 2, 2), (1, 1, 2, 2),
                                 "VALID")

    def up2(y):
        return jnp.repeat(jnp.repeat(y, 2, axis=2), 2, axis=3)

    wgt, b, g, be = params["down1"]; y = bn_relu(pool2(conv(x, wgt, b)), g, be)
    wgt, b, g, be = params["down2"]; y = bn_relu(pool2(conv(y, wgt, b)), g, be)
    wgt, b, g, be = params["bottleneck"]; y = bn_relu(conv(y, wgt, b), g, be)
    wgt, b, g, be = params["up1"]; y = bn_relu(up2(conv(y, wgt, b)), g, be)
    wgt, b, g, be = params["up2"]; y = bn_relu(up2(conv(y, wgt, b)), g, be)
    wgt, b = params["last"]
    return conv(y, wgt, b)


# --------------------------------------------------------------------------------- main

if __name__ == "__main__":
    K, NUM_FILTERS, NUM_COLORS, IN_CH = 3, 8, 4, 3
    N, H, W = 2, 16, 16

    keys = iter(jax.random.split(jax.random.PRNGKey(0), 32))

    def conv_init(cout, cin):
        fan_in = cin * K * K
        bound = 1.0 / np.sqrt(fan_in)
        wgt = jax.random.uniform(next(keys), (cout, cin, K, K), minval=-bound,
                                 maxval=bound, dtype=jnp.float32)
        b = jax.random.uniform(next(keys), (cout,), minval=-bound, maxval=bound,
                               dtype=jnp.float32)
        return wgt, b

    def bn_init(c):
        g = jax.random.uniform(next(keys), (c,), minval=0.5, maxval=1.5,
                               dtype=jnp.float32)
        be = 0.1 * jax.random.normal(next(keys), (c,), dtype=jnp.float32)
        return g, be

    params = {
        "down1": conv_init(NUM_FILTERS, IN_CH) + bn_init(NUM_FILTERS),
        "down2": conv_init(2 * NUM_FILTERS, NUM_FILTERS) + bn_init(2 * NUM_FILTERS),
        "bottleneck": conv_init(2 * NUM_FILTERS, 2 * NUM_FILTERS)
                      + bn_init(2 * NUM_FILTERS),
        "up1": conv_init(NUM_FILTERS, 2 * NUM_FILTERS) + bn_init(NUM_FILTERS),
        "up2": conv_init(NUM_COLORS, NUM_FILTERS) + bn_init(NUM_COLORS),
        "last": conv_init(NUM_COLORS, NUM_COLORS),
    }
    x = jax.random.normal(next(keys), (N, IN_CH, H, W), dtype=jnp.float32)

    out = jax.block_until_ready(base_model_forward(x, params))
    ref = jax.block_until_ready(base_model_reference(x, params, K))

    assert out.shape == (N, NUM_COLORS, H, W), out.shape
    max_err = float(jnp.max(jnp.abs(out - ref)))
    assert jnp.allclose(out, ref, atol=5e-3, rtol=5e-3), f"max abs err {max_err}"
    print("KERNEL_OK")
</pallas_src>

<mosaic_0001>
module attributes {stable_mosaic.version = 11 : i64} {
  func.func @_stage_kernel(%arg0: i32, %arg1: memref<8x512xf32, #tpu.memory_space<vmem>>, %arg2: memref<8x72xf32, #tpu.memory_space<vmem>>, %arg3: memref<8x1xf32, #tpu.memory_space<vmem>>, %arg4: memref<9x512xf32, #tpu.memory_space<vmem>>, %arg5: memref<4x512x256xf32, #tpu.memory_space<vmem>>, %arg6: memref<8x1xf32, #tpu.memory_space<vmem>>, %arg7: memref<8x1xf32, #tpu.memory_space<vmem>>, %arg8: memref<1x256xf32, #tpu.memory_space<vmem>>, %arg9: memref<8x256xf32, #tpu.memory_space<vmem>>) attributes {dimension_semantics = [#tpu.dimension_semantics<parallel>], iteration_bounds = array<i64: 1>, scalar_prefetch = 0 : i64, scratch_operands = 0 : i64, tpu.core_type = #tpu.core_type<tc>, window_params = [{pipeline_mode = #tpu.pipeline_mode<synchronous>, transform_indices = @transform_0, window_bounds = array<i64: 8, 512>}, {transform_indices = @transform_1, window_bounds = array<i64: 8, 72>}, {transform_indices = @transform_2, window_bounds = array<i64: 8, 1>}, {pipeline_mode = #tpu.pipeline_mode<synchronous>, transform_indices = @transform_3, window_bounds = array<i64: 9, 512>}, {pipeline_mode = #tpu.pipeline_mode<synchronous>, transform_indices = @transform_4, window_bounds = array<i64: 4, 512, 256>}, {transform_indices = @transform_5, window_bounds = array<i64: 8, 1>}, {transform_indices = @transform_6, window_bounds = array<i64: 8, 1>}, {pipeline_mode = #tpu.pipeline_mode<synchronous>, transform_indices = @transform_7, window_bounds = array<i64: 1, 256>}, {transform_indices = @transform_8, window_bounds = array<i64: 8, 256>}]} {
    %c0 = arith.constant 0 : index
    %c0_0 = arith.constant 0 : index
    %0 = vector.load %arg1[%c0, %c0_0] : memref<8x512xf32, #tpu.memory_space<vmem>>, vector<8x512xf32>
    %c0_1 = arith.constant 0 : index
    %c0_2 = arith.constant 0 : index
    %1 = vector.load %arg4[%c0_1, %c0_2] : memref<9x512xf32, #tpu.memory_space<vmem>>, vector<9x512xf32>
    %2 = vector.extract_strided_slice %1 {offsets = [4, 0], sizes = [1, 512], strides = [1, 1]} : vector<9x512xf32> to vector<1x512xf32>
    %c17_i32 = arith.constant 17 : i32
    %3 = tpu.dynamic_rotate %0 by %c17_i32 dim 1 : vector<8x512xf32>, i32 -> vector<8x512xf32>
    %4 = vector.extract_strided_slice %1 {offsets = [0, 0], sizes = [1, 512], strides = [1, 1]} : vector<9x512xf32> to vector<1x512xf32>
    %5 = vector.broadcast %4 : vector<1x512xf32> to vector<8x512xf32>
    %6 = arith.mulf %3, %5 : vector<8x512xf32>
    %c16_i32 = arith.constant 16 : i32
    %7 = tpu.dynamic_rotate %0 by %c16_i32 dim 1 : vector<8x512xf32>, i32 -> vector<8x512xf32>
    %8 = vector.extract_strided_slice %1 {offsets = [1, 0], sizes = [1, 512], strides = [1, 1]} : vector<9x512xf32> to vector<1x512xf32>
    %9 = vector.broadcast %8 : vector<1x512xf32> to vector<8x512xf32>
    %10 = arith.mulf %7, %9 : vector<8x512xf32>
    %c15_i32 = arith.constant 15 : i32
    %11 = tpu.dynamic_rotate %0 by %c15_i32 dim 1 : vector<8x512xf32>, i32 -> vector<8x512xf32>
    %12 = vector.extract_strided_slice %1 {offsets = [2, 0], sizes = [1, 512], strides = [1, 1]} : vector<9x512xf32> to vector<1x512xf32>
    %13 = vector.broadcast %12 : vector<1x512xf32> to vector<8x512xf32>
    %14 = arith.mulf %11, %13 : vector<8x512xf32>
    %c1_i32 = arith.constant 1 : i32
    %15 = tpu.dynamic_rotate %0 by %c1_i32 dim 1 : vector<8x512xf32>, i32 -> vector<8x512xf32>
    %16 = vector.extract_strided_slice %1 {offsets = [3, 0], sizes = [1, 512], strides = [1, 1]} : vector<9x512xf32> to vector<1x512xf32>
    %17 = vector.broadcast %16 : vector<1x512xf32> to vector<8x512xf32>
    %18 = arith.mulf %15, %17 : vector<8x512xf32>
    %19 = vector.extract_strided_slice %1 {offsets = [4, 0], sizes = [1, 512], strides = [1, 1]} : vector<9x512xf32> to vector<1x512xf32>
    %20 = vector.broadcast %19 : vector<1x512xf32> to vector<8x512xf32>
    %21 = arith.mulf %0, %20 : vector<8x512xf32>
    %c511_i32 = arith.constant 511 : i32
    %22 = tpu.dynamic_rotate %0 by %c511_i32 dim 1 : vector<8x512xf32>, i32 -> vector<8x512xf32>
    %23 = vector.extract_strided_slice %1 {offsets = [5, 0], sizes = [1, 512], strides = [1, 1]} : vector<9x512xf32> to vector<1x512xf32>
    %24 = vector.broadcast %23 : vector<1x512xf32> to vector<8x512xf32>
    %25 = arith.mulf %22, %24 : vector<8x512xf32>
    %c497_i32 = arith.constant 497 : i32
    %26 = tpu.dynamic_rotate %0 by %c497_i32 dim 1 : vector<8x512xf32>, i32 -> vector<8x512xf32>
    %27 = vector.extract_strided_slice %1 {offsets = [6, 0], sizes = [1, 512], strides = [1, 1]} : vector<9x512xf32> to vector<1x512xf32>
    %28 = vector.broadcast %27 : vector<1x512xf32> to vector<8x512xf32>
    %29 = arith.mulf %26, %28 : vector<8x512xf32>
    %c496_i32 = arith.constant 496 : i32
    %30 = tpu.dynamic_rotate %0 by %c496_i32 dim 1 : vector<8x512xf32>, i32 -> vector<8x512xf32>
    %31 = vector.extract_strided_slice %1 {offsets = [7, 0], sizes = [1, 512], strides = [1, 1]} : vector<9x512xf32> to vector<1x512xf32>
    %32 = vector.broadcast %31 : vector<1x512xf32> to vector<8x512xf32>
    %33 = arith.mulf %30, %32 : vector<8x512xf32>
    %c495_i32 = arith.constant 495 : i32
    %34 = tpu.dynamic_rotate %0 by %c495_i32 dim 1 : vector<8x512xf32>, i32 -> vector<8x512xf32>
    %35 = vector.extract_strided_slice %1 {offsets = [8, 0], sizes = [1, 512], strides = [1, 1]} : vector<9x512xf32> to vector<1x512xf32>
    %36 = vector.broadcast %35 : vector<1x512xf32> to vector<8x512xf32>
    %37 = arith.mulf %34, %36 : vector<8x512xf32>
    %38 = tpu.concatenate %6, %10, %14, %18, %21, %25, %29, %33, %37 in 0 : vector<8x512xf32>, vector<8x512xf32>, vector<8x512xf32>, vector<8x512xf32>, vector<8x512xf32>, vector<8x512xf32>, vector<8x512xf32>, vector<8x512xf32>, vector<8x512xf32> -> vector<72x512xf32>
    %c0_3 = arith.constant 0 : index
    %c0_4 = arith.constant 0 : index
    %39 = vector.load %arg2[%c0_3, %c0_4] : memref<8x72xf32, #tpu.memory_space<vmem>>, vector<8x72xf32>
    %cst = arith.constant dense<0.000000e+00> : vector<8x512xf32>
    %40 = tpu.matmul %39, %38, %cst {dimension_numbers = #tpu.dot_dimension_numbers<[1], [0], [0], [1], [0, 0, 1, 1], [], []>} : vector<8x72xf32>, vector<72x512xf32>, vector<8x512xf32> -> vector<8x512xf32>
    %c0_5 = arith.constant 0 : index
    %c0_6 = arith.constant 0 : index
    %41 = vector.load %arg3[%c0_5, %c0_6] : memref<8x1xf32, #tpu.memory_space<vmem>>, vector<8x1xf32>
    %42 = vector.broadcast %41 : vector<8x1xf32> to vector<8x512xf32>
    %43 = vector.broadcast %2 : vector<1x512xf32> to vector<8x512xf32>
    %44 = arith.mulf %42, %43 : vector<8x512xf32>
    %45 = arith.addf %40, %44 : vector<8x512xf32>
    %c0_7 = arith.constant 0 : index
    %c0_8 = arith.constant 0 : index
    %c0_9 = arith.constant 0 : index
    %46 = vector.load %arg5[%c0_7, %c0_8, %c0_9] : memref<4x512x256xf32, #tpu.memory_space<vmem>>, vector<1x512x256xf32>
    %47 = vector.shape_cast %46 : vector<1x512x256xf32> to vector<512x256xf32>
    %cst_10 = arith.constant dense<0.000000e+00> : vector<8x256xf32>
    %48 = tpu.matmul %45, %47, %cst_10 {dimension_numbers = #tpu.dot_dimension_numbers<[1], [0], [0], [1], [0, 0, 1, 1], [], []>} : vector<8x512xf32>, vector<512x256xf32>, vector<8x256xf32> -> vector<8x256xf32>
    %c1 = arith.constant 1 : index
    %c0_11 = arith.constant 0 : index
    %c0_12 = arith.constant 0 : index
    %49 = vector.load %arg5[%c1, %c0_11, %c0_12] : memref<4x512x256xf32, #tpu.memory_space<vmem>>, vector<1x512x256xf32>
    %50 = vector.shape_cast %49 : vector<1x512x256xf32> to vector<512x256xf32>
    %cst_13 = arith.constant dense<0.000000e+00> : vector<8x256xf32>
    %51 = tpu.matmul %45, %50, %cst_13 {dimension_numbers = #tpu.dot_dimension_numbers<[1], [0], [0], [1], [0, 0, 1, 1], [], []>} : vector<8x512xf32>, vector<512x256xf32>, vector<8x256xf32> -> vector<8x256xf32>
    %c2 = arith.constant 2 : index
    %c0_14 = arith.constant 0 : index
    %c0_15 = arith.constant 0 : index
    %52 = vector.load %arg5[%c2, %c0_14, %c0_15] : memref<4x512x256xf32, #tpu.memory_space<vmem>>, vector<1x512x256xf32>
    %53 = vector.shape_cast %52 : vector<1x512x256xf32> to vector<512x256xf32>
    %cst_16 = arith.constant dense<0.000000e+00> : vector<8x256xf32>
    %54 = tpu.matmul %45, %53, %cst_16 {dimension_numbers = #tpu.dot_dimension_numbers<[1], [0], [0], [1], [0, 0, 1, 1], [], []>} : vector<8x512xf32>, vector<512x256xf32>, vector<8x256xf32> -> vector<8x256xf32>
    %c3 = arith.constant 3 : index
    %c0_17 = arith.constant 0 : index
    %c0_18 = arith.constant 0 : index
    %55 = vector.load %arg5[%c3, %c0_17, %c0_18] : memref<4x512x256xf32, #tpu.memory_space<vmem>>, vector<1x512x256xf32>
    %56 = vector.shape_cast %55 : vector<1x512x256xf32> to vector<512x256xf32>
    %cst_19 = arith.constant dense<0.000000e+00> : vector<8x256xf32>
    %57 = tpu.matmul %45, %56, %cst_19 {dimension_numbers = #tpu.dot_dimension_numbers<[1], [0], [0], [1], [0, 0, 1, 1], [], []>} : vector<8x512xf32>, vector<512x256xf32>, vector<8x256xf32> -> vector<8x256xf32>
    %58 = arith.maximumf %48, %51 : vector<8x256xf32>
    %59 = arith.maximumf %54, %57 : vector<8x256xf32>
    %60 = arith.maximumf %58, %59 : vector<8x256xf32>
    %cst_20 = arith.constant dense<0.000000e+00> : vector<8xf32>
    %61 = vector.multi_reduction <add>, %60, %cst_20 [1] : vector<8x256xf32> to vector<8xf32>
    %62 = vector.shape_cast %61 : vector<8xf32> to vector<8x1xf32>
    %cst_21 = arith.constant 7.812500e-03 : f32
    %63 = vector.broadcast %cst_21 : f32 to vector<8x1xf32>
    %64 = arith.mulf %62, %63 : vector<8x1xf32>
    %65 = vector.broadcast %64 : vector<8x1xf32> to vector<8x256xf32>
    %66 = arith.subf %60, %65 : vector<8x256xf32>
    %c0_22 = arith.constant 0 : index
    %c0_23 = arith.constant 0 : index
    %67 = vector.load %arg8[%c0_22, %c0_23] : memref<1x256xf32, #tpu.memory_space<vmem>>, vector<1x256xf32>
    %68 = vector.broadcast %67 : vector<1x256xf32> to vector<8x256xf32>
    %69 = arith.mulf %66, %68 : vector<8x256xf32>
    %70 = arith.mulf %69, %69 : vector<8x256xf32>
    %cst_24 = arith.constant dense<0.000000e+00> : vector<8xf32>
    %71 = vector.multi_reduction <add>, %70, %cst_24 [1] : vector<8x256xf32> to vector<8xf32>
    %72 = vector.shape_cast %71 : vector<8xf32> to vector<8x1xf32>
    %cst_25 = arith.constant 7.812500e-03 : f32
    %73 = vector.broadcast %cst_25 : f32 to vector<8x1xf32>
    %74 = arith.mulf %72, %73 : vector<8x1xf32>
    %c0_26 = arith.constant 0 : index
    %c0_27 = arith.constant 0 : index
    %75 = vector.load %arg6[%c0_26, %c0_27] : memref<8x1xf32, #tpu.memory_space<vmem>>, vector<8x1xf32>
    %cst_28 = arith.constant 9.99999974E-6 : f32
    %76 = vector.broadcast %cst_28 : f32 to vector<8x1xf32>
    %77 = arith.addf %74, %76 : vector<8x1xf32>
    %78 = math.rsqrt %77 : vector<8x1xf32>
    %79 = arith.mulf %75, %78 : vector<8x1xf32>
    %c0_29 = arith.constant 0 : index
    %c0_30 = arith.constant 0 : index
    %80 = vector.load %arg7[%c0_29, %c0_30] : memref<8x1xf32, #tpu.memory_space<vmem>>, vector<8x1xf32>
    %81 = arith.mulf %64, %79 : vector<8x1xf32>
    %82 = arith.subf %80, %81 : vector<8x1xf32>
    %83 = vector.broadcast %79 : vector<8x1xf32> to vector<8x256xf32>
    %84 = arith.mulf %60, %83 : vector<8x256xf32>
    %85 = vector.broadcast %82 : vector<8x1xf32> to vector<8x256xf32>
    %86 = arith.addf %84, %85 : vector<8x256xf32>
    %cst_31 = arith.constant 0.000000e+00 : f32
    %87 = vector.broadcast %cst_31 : f32 to vector<8x256xf32>
    %88 = arith.maximumf %86, %87 : vector<8x256xf32>
    %c0_32 = arith.constant 0 : index
    %c0_33 = arith.constant 0 : index
    %89 = vector.load %arg9[%c0_32, %c0_33] : memref<8x256xf32, #tpu.memory_space<vmem>>, vector<8x256xf32>
    tpu.vector_store %arg9[%c0_32, %c0_33], %88 {strides = array<i32>} : memref<8x256xf32, #tpu.memory_space<vmem>>, vector<8x256xf32>,
    return
  }
  func.func @transform_0(%arg0: i32) -> (i32, i32) {
    %c0_i32 = arith.constant 0 : i32
    %c0_i32_0 = arith.constant 0 : i32
    %c0_i32_1 = arith.constant 0 : i32
    return %c0_i32, %c0_i32_0 : i32, i32
  }
  func.func @transform_1(%arg0: i32) -> (i32, i32) {
    %c0_i32 = arith.constant 0 : i32
    %c0_i32_0 = arith.constant 0 : i32
    return %arg0, %c0_i32 : i32, i32
  }
  func.func @transform_2(%arg0: i32) -> (i32, i32) {
    %c0_i32 = arith.constant 0 : i32
    %c0_i32_0 = arith.constant 0 : i32
    return %arg0, %c0_i32 : i32, i32
  }
  func.func @transform_3(%arg0: i32) -> (i32, i32) {
    %c0_i32 = arith.constant 0 : i32
    %c0_i32_0 = arith.constant 0 : i32
    %c0_i32_1 = arith.constant 0 : i32
    return %c0_i32, %c0_i32_0 : i32, i32
  }
  func.func @transform_4(%arg0: i32) -> (i32, i32, i32) {
    %c0_i32 = arith.constant 0 : i32
    %c0_i32_0 = arith.constant 0 : i32
    %c0_i32_1 = arith.constant 0 : i32
    %c0_i32_2 = arith.constant 0 : i32
    return %c0_i32, %c0_i32_0, %c0_i32_1 : i32, i32, i32
  }
  func.func @transform_5(%arg0: i32) -> (i32, i32) {
    %c0_i32 = arith.constant 0 : i32
    %c0_i32_0 = arith.constant 0 : i32
    return %arg0, %c0_i32 : i32, i32
  }
  func.func @transform_6(%arg0: i32) -> (i32, i32) {
    %c0_i32 = arith.constant 0 : i32
    %c0_i32_0 = arith.constant 0 : i32
    return %arg0, %c0_i32 : i32, i32
  }
  func.func @transform_7(%arg0: i32) -> (i32, i32) {
    %c0_i32 = arith.constant 0 : i32
    %c0_i32_0 = arith.constant 0 : i32
    %c0_i32_1 = arith.constant 0 : i32
    return %c0_i32, %c0_i32_0 : i32, i32
  }
  func.func @transform_8(%arg0: i32) -> (i32, i32) {
    %c0_i32 = arith.constant 0 : i32
    %c0_i32_0 = arith.constant 0 : i32
    return %arg0, %c0_i32 : i32, i32
  }
}

</mosaic_0001>

<bundles_post_ra>
// kernel: tpu_custom_call.1
= control target key start
LH: loop header
LB: loop body
LE: loop exit
PB: predicated region body
PF: predicated region fallthrough
CT: control target
= control target key end

     0   :  { %13 = vsyncpa [#allocation3], 0  ;;  %s2934_s0 = inlined_call_operand.hbm [shape: f32[8,512], index: 0, kind: input, shape index: {}]   ;;  %s2935_s1 = inlined_call_operand.hbm [shape: f32[8,72], index: 1, kind: input, shape index: {}]   ;;  %s2936_s2 = inlined_call_operand.vmem [shape: f32[8,1], index: 2, kind: input, shape index: {}]   ;;  %s2937_s3 = inlined_call_operand.hbm [shape: f32[9,512], index: 3, kind: input, shape index: {}]   ;;  %s2938_s4 = inlined_call_operand.hbm [shape: f32[4,512,256], index: 4, kind: input, shape index: {}]   ;;  %s2939_s5 = inlined_call_operand.vmem [shape: f32[8,1], index: 5, kind: input, shape index: {}]   ;;  %s2940_s6 = inlined_call_operand.vmem [shape: f32[8,1], index: 6, kind: input, shape index: {}]   ;;  %s2941_s7 = inlined_call_operand.hbm [shape: f32[1,256], index: 7, kind: input, shape index: {}]   ;;  %s2942_s8 = inlined_call_operand.hbm [shape: f32[8,256], index: 8, kind: output, shape index: {}]  }
   0x1   :  { %14 = vsyncpa [#allocation6], 0 }
   0x2   :  { %15 = vsyncpa [#allocation9], 0 }
   0x3   :  { %16 = vsyncpa [#allocation4], 0  ;;  %s2425_s27 = smov [#allocation5]   ;;  %s2426_s29 = smov [#allocation8]  }
   0x4   :  { %s33_s28 = sshll.u32 %s2425_s27, 4  ;;  %s56_s30 = sshll.u32 %s2426_s29, 4  ;;  %s34_s28 = int_to_ptr.vmem [resolvable:$true] %s33_s28  ;;  %s2489_s30 = int_to_ptr.vmem [resolvable:$true] %s56_s30 }
   0x5   :  { %s2285_s11 = scalar_lea.hbm %s2935_s1, 128 }
   0x6   :  { %p2286_p0 = scmp.ne.s32.totalorder %s2935_s1, %s2285_s11  ;;  %p2289_p1 = scmp.lt.u32.totalorder %s2285_s11, %s2935_s1 }
   0x8   :  { %p2291_p2 = pnand %p2289_p1, %p2286_p0 }
   0xa   :  { %2294 = shalt.err (!%p2291_p2)
}
   0xb   :  { %s2295_s16 = scalar_lea.vmem %s34_s28, 128  ;;  %p2300_p4 = scmp.lt.s32.totalorder %s34_s28, %s34_s28 }
   0xc   :  { %p2296_p3 = scmp.ne.s32.totalorder %s34_s28, %s2295_s16  ;;  %p2301_p5 = scmp.lt.s32.totalorder %s2295_s16, %s2295_s16 }
   0xe   :  { %p2302_p6 = por %p2301_p5, %p2300_p4 }
  0x10   :  { %p2303_p7 = pnand %p2302_p6, %p2296_p3 }
  0x12   :  { %2306 = shalt.err (!%p2303_p7)
}
  0x13   :  { %36 = dma.hbm_to_vmem [thread:$0]  %s2935_s1, 128, %s34_s28, [#allocation6]  }
  0x14   :  { %s2307_s21 = scalar_lea.hbm %s2938_s4, 65536 }
  0x15   :  { %p2308_p8 = scmp.ne.s32.totalorder %s2938_s4, %s2307_s21  ;;  %p2311_p9 = scmp.lt.u32.totalorder %s2307_s21, %s2938_s4 }
  0x17   :  { %p2313_p10 = pnand %p2311_p9, %p2308_p8 }
  0x19   :  { %2316 = shalt.err (!%p2313_p10)
}
  0x1a   :  { %s2317_s26 = scalar_lea.vmem %s2489_s30, 65536  ;;  %p2322_p12 = scmp.lt.s32.totalorder %s2489_s30, %s2489_s30 }
  0x1b   :  { %p2318_p11 = scmp.ne.s32.totalorder %s2489_s30, %s2317_s26  ;;  %p2323_p13 = scmp.lt.s32.totalorder %s2317_s26, %s2317_s26 }
  0x1d   :  { %p2324_p0 = por %p2323_p13, %p2322_p12 }
  0x1f   :  { %p2325_p1 = pnand %p2324_p0, %p2318_p11 }
  0x21   :  { %2328 = shalt.err (!%p2325_p1)
}
  0x22   :  { %s2427_s1 = smov 256   ;;  %s2428_s27 = smov 16  }
  0x23   :  { %62 = dma.hbm_to_vmem [thread:$0]  %s2938_s4, 65536, %s2489_s30, [#allocation9], %s2427_s1, %s2427_s1, %s2428_s27  }
  0x24   :  { %s2429_s9 = smov [#allocation2]   ;;  %s2430_s11 = smov [#allocation7]  }
  0x25   :  { %s23_s10 = sshll.u32 %s2429_s9, 4  ;;  %s44_s12 = sshll.u32 %s2430_s11, 4  ;;  %s24_s10 = int_to_ptr.vmem [resolvable:$true] %s23_s10  ;;  %s2521_s12 = int_to_ptr.vmem [resolvable:$true] %s44_s12 }
  0x26   :  { %s2329_s15 = scalar_lea.hbm %s2934_s0, 512 }
  0x27   :  { %p2330_p2 = scmp.ne.s32.totalorder %s2934_s0, %s2329_s15  ;;  %p2333_p3 = scmp.lt.u32.totalorder %s2329_s15, %s2934_s0 }
  0x29   :  { %p2335_p4 = pnand %p2333_p3, %p2330_p2 }
  0x2b   :  { %2338 = shalt.err (!%p2335_p4)
}
  0x2c   :  { %s2339_s4 = scalar_lea.vmem %s24_s10, 512  ;;  %p2344_p6 = scmp.lt.s32.totalorder %s24_s10, %s24_s10 }
  0x2d   :  { %p2340_p5 = scmp.ne.s32.totalorder %s24_s10, %s2339_s4  ;;  %p2345_p7 = scmp.lt.s32.totalorder %s2339_s4, %s2339_s4 }
  0x2f   :  { %p2346_p8 = por %p2345_p7, %p2344_p6 }
  0x31   :  { %p2347_p9 = pnand %p2346_p8, %p2340_p5 }
  0x33   :  { %2350 = shalt.err (!%p2347_p9)
}
  0x34   :  { %26 = dma.hbm_to_vmem [thread:$0]  %s2934_s0, 512, %s24_s10, [#allocation3]  }
  0x35   :  { %s2351_s23 = scalar_lea.hbm %s2937_s3, 1024 }
  0x36   :  { %p2352_p10 = scmp.ne.s32.totalorder %s2937_s3, %s2351_s23  ;;  %p2355_p11 = scmp.lt.u32.totalorder %s2351_s23, %s2937_s3 }
  0x38   :  { %p2357_p12 = pnand %p2355_p11, %p2352_p10 }
  0x3a   :  { %2360 = shalt.err (!%p2357_p12)
}
  0x3b   :  { %s2361_s28 = scalar_lea.vmem %s2521_s12, 1024  ;;  %p2366_p0 = scmp.lt.s32.totalorder %s2521_s12, %s2521_s12 }
  0x3c   :  { %p2362_p13 = scmp.ne.s32.totalorder %s2521_s12, %s2361_s28  ;;  %p2367_p1 = scmp.lt.s32.totalorder %s2361_s28, %s2361_s28 }
  0x3e   :  { %p2368_p2 = por %p2367_p1, %p2366_p0 }
  0x40   :  { %p2369_p3 = pnand %p2368_p2, %p2362_p13 }
  0x42   :  { %2372 = shalt.err (!%p2369_p3)
}
  0x43   :  { %s2431_s0 = smov 512   ;;  %s2432_s29 = smov 32  }
  0x44   :  { %50 = dma.hbm_to_vmem [thread:$0]  %s2937_s3, 1024, %s2521_s12, [#allocation6], %s2431_s0, %s2431_s0, %s2432_s29  }
  0x45   :  { %s2433_s11 = smov [#allocation10]   ;;  %s2373_s16 = scalar_lea.hbm %s2941_s7, 32 }
  0x46   :  { %s73_s13 = sshll.u32 %s2433_s11, 4  ;;  %p2374_p4 = scmp.ne.s32.totalorder %s2941_s7, %s2373_s16  ;;  %s74_s13 = int_to_ptr.vmem [resolvable:$true] %s73_s13 }
  0x47   :  { %p2377_p5 = scmp.lt.u32.totalorder %s2373_s16, %s2941_s7 }
  0x49   :  { %p2379_p6 = pnand %p2377_p5, %p2374_p4 }
  0x4b   :  { %2382 = shalt.err (!%p2379_p6)
}
  0x4c   :  { %s2383_s30 = scalar_lea.vmem %s74_s13, 32  ;;  %p2388_p8 = scmp.lt.s32.totalorder %s74_s13, %s74_s13 }
  0x4d   :  { %p2384_p7 = scmp.ne.s32.totalorder %s74_s13, %s2383_s30  ;;  %p2389_p9 = scmp.lt.s32.totalorder %s2383_s30, %s2383_s30 }
  0x4f   :  { %p2390_p10 = por %p2389_p9, %p2388_p8 }
  0x51   :  { %p2391_p11 = pnand %p2390_p10, %p2384_p7 }
  0x53   :  { %2394 = shalt.err (!%p2391_p11)
}
  0x54   :  { %76 = dma.hbm_to_vmem [thread:$0]  %s2941_s7, 32, %s74_s13, [#allocation9]  }
  0x55   :  { %2417 = dma.done.wait [#allocation3], 512  }
  0x56   :  { %2418 = vsyncadd [#allocation3], 4294966784 }
  0x57   :  { %2419 = dma.done.wait [#allocation6], 1152  }
  0x58   :  { %2420 = vsyncadd [#allocation6], 4294966144 }
  0x59   :  { %2421 = dma.done.wait [#allocation9], 65568  }
  0x5a   :  { %2422 = vsyncadd [#allocation9], 4294901728  ;;  %v2564_v0 = vld [vmem:[#allocation2] sm:$0xff]  ;;  %s2434_s20 = smov 17   ;;  %v2570_v1 = vld [vmem:[#allocation2 + $0x8] sm:$0xff]  ;;  %s2435_s7 = smov 15   ;;  %v112_v7 = vlaneseq }
  0x5b   :  { %139 = vrot.lane.b32.xlu1 %v2564_v0, %s2428_s27  ;;  %104 = vrot.lane.b32.xlu0 %v2564_v0, %s2434_s20  ;;  %v2576_v2 = vld [vmem:[#allocation2 + $0x18] sm:$0xff]  ;;  %s2436_s21 = smov 1   ;;  %v2591_v3 = vld [vmem:[#allocation2 + $0x10] sm:$0xff]  ;;  %s2437_s22 = smov 127   ;;  %v2440_v4 = vmov 0.0   ;;  %v2442_v5 = vmov 0  }
  0x5c   :  { %s2438_s23 = smov 113   ;;  %s2439_s24 = smov 112   ;;  %469 = vmatprep.mubr.f32.mxu0 %v2440_v4  ;;  %540 = vmatprep.mubr.f32.mxu1 %v2440_v4  ;;  %v391_v6 = vld [vmem:[%s2936_s2] sm:$0xff]  ;;  %v2619_v8 = vshrl.u32 %v112_v7, 7  ;;  %v2621_v9 = vand.u32 127, %v112_v7  ;;  %v2629_v12 = vld [vmem:[#allocation7 + $0x8] sm:$0xff] }
  0x5d   :  { %s2441_s25 = smov 111   ;;  %2281 = vset.pattern.permute.xlu0 %v2442_v5  ;;  %2282 = vset.pattern.permute.xlu1 %v2442_v5  ;;  %v2637_v17 = vld [vmem:[#allocation7] sm:$0xff]  ;;  %vm401_vm8 = vcmask 588800   ;;  %s2443_s29 = smov [#allocation11]  }
  0x5e   :  { %v2624_v10 = vsub.s32 1, %v2619_v8  ;;  %v2627_v11 = vsub.s32 0, %v2619_v8  ;;  %vm147_vm0 = vcmp.lt.s32.totalorder %v2621_v9, 16  ;;  %vm114_vm1 = vcmp.lt.s32.totalorder %v2621_v9, 17  ;;  %s1693_s9 = sshll.u32 %s2443_s29, 4  ;;  %s1694_s9 = int_to_ptr.vmem [resolvable:$true] %s1693_s9 }
  0x5f   :  { %141 = vrot.lane.b32.xlu1 %v2570_v1, %s2428_s27  ;;  %106 = vrot.lane.b32.xlu0 %v2570_v1, %s2434_s20  ;;  %v2664_v33 = vsub.s32 2, %v2619_v8  ;;  %v2667_v34 = vsub.s32 3, %v2619_v8  ;;  %vm180_vm2 = vcmp.lt.s32.totalorder %v2621_v9, 15  ;;  %vm213_vm3 = vcmp.lt.s32.totalorder %v2621_v9, 1  ;;  %p2400_p13 = scmp.lt.s32.totalorder %s1694_s9, %s1694_s9 }
  0x60   :  { %v126_v15 = vrot.slane %v2629_v12, %v2627_v11  ;;  %v159_v16 = vrot.slane %v2629_v12, %v2624_v10  ;;  %v155_v22 = vrot.slane %v2637_v17, %v2624_v10  ;;  %v122_v23 = vrot.slane %v2637_v17, %v2627_v11 }
  0x61   :  { %v192_v38 = vrot.slane %v2629_v12, %v2664_v33  ;;  %v225_v39 = vrot.slane %v2629_v12, %v2667_v34  ;;  %v2683_v43 = vsub.s32 4, %v2619_v8  ;;  %v221_v45 = vrot.slane %v2637_v17, %v2667_v34 }
  0x62   :  { %v188_v48 = vrot.slane %v2637_v17, %v2664_v33  ;;  %v2693_v49 = vsub.s32 5, %v2619_v8  ;;  %vm266_vm4 = vcmp.lt.s32.totalorder %v2621_v9, 127  ;;  %vm299_vm5 = vcmp.lt.s32.totalorder %v2621_v9, 113 }
  0x63   :  { %145 = vrot.lane.b32.xlu1 %v2576_v2, %s2428_s27  ;;  %110 = vrot.lane.b32.xlu0 %v2576_v2, %s2434_s20  ;;  %v2701_v53 = vrot.slane %v2629_v12, %v2683_v43  ;;  %v2718_v63 = vrot.slane %v2637_v17, %v2683_v43  ;;  %vm332_vm6 = vcmp.lt.s32.totalorder %v2621_v9, 112  ;;  %vm365_vm7 = vcmp.lt.s32.totalorder %v2621_v9, 111 }
  0x64   :  { %v278_v58 = vrot.slane %v2629_v12, %v2693_v49 }
  0x65   :  { %v255_v62 = vmul.f32 %v2701_v53, %v2570_v1 }
  0x67   :  { %174 = vrot.lane.b32.xlu1 %v2570_v1, %s2435_s7  ;;  %172 = vrot.lane.b32.xlu0 %v2564_v0, %s2435_s7 }
  0x6b   :  { %207 = vrot.lane.b32.xlu1 %v2570_v1, %s2436_s21  ;;  %205 = vrot.lane.b32.xlu0 %v2564_v0, %s2436_s21 }
  0x6f   :  { %211 = vrot.lane.b32.xlu1 %v2576_v2, %s2436_s21  ;;  %178 = vrot.lane.b32.xlu0 %v2576_v2, %s2435_s7 }
  0x73   :  { %262 = vrot.lane.b32.xlu1 %v2591_v3, %s2437_s22  ;;  %260 = vrot.lane.b32.xlu0 %v2570_v1, %s2437_s22 }
  0x77   :  { %293 = vrot.lane.b32.xlu1 %v2570_v1, %s2438_s23  ;;  %258 = vrot.lane.b32.xlu0 %v2564_v0, %s2437_s22 }
  0x7b   :  { %326 = vrot.lane.b32.xlu1 %v2570_v1, %s2439_s24  ;;  %295 = vrot.lane.b32.xlu0 %v2591_v3, %s2438_s23 }
  0x7f   :  { %291 = vrot.lane.b32.xlu1 %v2564_v0, %s2438_s23  ;;  %328 = vrot.lane.b32.xlu0 %v2591_v3, %s2439_s24 }
  0x83   :  { %359 = vrot.lane.b32.xlu1 %v2570_v1, %s2441_s25  ;;  %324 = vrot.lane.b32.xlu0 %v2564_v0, %s2439_s24  ;;  %v254_v1 = vmul.f32 %v2718_v63, %v2564_v0 }
  0x87   :  { %357 = vrot.lane.b32.xlu1 %v2564_v0, %s2441_s25  ;;  %361 = vrot.lane.b32.xlu0 %v2591_v3, %s2441_s25 }
  0x8b   :  { %143 = vrot.lane.b32.xlu1 %v2591_v3, %s2428_s27  ;;  %108 = vrot.lane.b32.xlu0 %v2591_v3, %s2434_s20 }
  0x8f   :  { %209 = vrot.lane.b32.xlu1 %v2591_v3, %s2436_s21  ;;  %176 = vrot.lane.b32.xlu0 %v2591_v3, %s2435_s7 }
  0x93   :  { %297 = vrot.lane.b32.xlu1 %v2576_v2, %s2438_s23  ;;  %264 = vrot.lane.b32.xlu0 %v2576_v2, %s2437_s22 }
  0x97   :  { %363 = vrot.lane.b32.xlu1 %v2576_v2, %s2441_s25  ;;  %330 = vrot.lane.b32.xlu0 %v2576_v2, %s2439_s24 }
  0x9b   :  { %394 = vperm.xlu0 %2281, %v391_v6   ;;  %v274_v6 = vrot.slane %v2637_v17, %v2693_v49 }
  0xcd   :  { %v140_v13 = vpop.permute.xlu1 %139  ;;  %v105_v14 = vpop.permute.xlu0 %104 }
  0xd1   :  { %v2639_v18 = vpop.permute.xlu1 %141  ;;  %v2641_v19 = vpop.permute.xlu0 %106 }
  0xd2   :  { %v150_v20 = vsel %vm147_vm0, %v140_v13, %v2639_v18  ;;  %v117_v21 = vsel %vm114_vm1, %v105_v14, %v2641_v19 }
  0xd3   :  { %v136_v24 = vmul.f32 %v126_v15, %v117_v21  ;;  %v169_v25 = vmul.f32 %v159_v16, %v150_v20  ;;  %v2733_v20 = vsub.s32 6, %v2619_v8  ;;  %v2736_v21 = vsub.s32 7, %v2619_v8 }
  0xd5   :  { %v2653_v26 = vpop.permute.xlu1 %145  ;;  %v2655_v27 = vpop.permute.xlu0 %110  ;;  %v1710_v28 = vpack.c.bf16 %v169_v25, %v136_v24  ;;  %v311_v0 = vrot.slane %v2629_v12, %v2733_v20  ;;  %v344_v25 = vrot.slane %v2629_v12, %v2736_v21  ;;  %v340_v12 = vrot.slane %v2637_v17, %v2736_v21 }
  0xd6   :  { %v151_v29 = vsel %vm147_vm0, %v2653_v26, %v140_v13  ;;  %v118_v30 = vsel %vm114_vm1, %v2655_v27, %v105_v14 }
  0xd7   :  { %v168_v31 = vmul.f32 %v155_v22, %v151_v29  ;;  %v135_v32 = vmul.f32 %v122_v23, %v118_v30  ;;  %1711 = vmatprep.subr.bf16.mxu0 %v1710_v28 }
  0xd9   :  { %v2669_v35 = vpop.permute.xlu1 %174  ;;  %v173_v36 = vpop.permute.xlu0 %172  ;;  %v1712_v37 = vpack.c.bf16 %v168_v31, %v135_v32  ;;  %v307_v32 = vrot.slane %v2637_v17, %v2733_v20  ;;  %v2771_v17 = vld [vmem:[#allocation7 + $0x18] sm:$0xff] }
  0xda   :  { %v183_v40 = vsel %vm180_vm2, %v173_v36, %v2669_v35 }
  0xdb   :  { %1713 = vmatpush1.bf16.msra.mxu0 %v1712_v37  ;;  %v202_v46 = vmul.f32 %v192_v38, %v183_v40 }
  0xdd   :  { %v2680_v41 = vpop.permute.xlu1 %207  ;;  %v206_v42 = vpop.permute.xlu0 %205 }
  0xde   :  { %v216_v44 = vsel %vm213_vm3, %v206_v42, %v2680_v41 }
  0xdf   :  { %v235_v47 = vmul.f32 %v225_v39, %v216_v44  ;;  %v2768_v44 = vld [vmem:[#allocation7 + $0x10] sm:$0xff] }
  0xe1   :  { %v2695_v50 = vpop.permute.xlu1 %211  ;;  %v2697_v51 = vpop.permute.xlu0 %178  ;;  %v1714_v52 = vpack.c.bf16 %v235_v47, %v202_v46  ;;  %v1704_v47 = vld [vmem:[#allocation7 + $0x20] ss:$0 sm:$0xff] }
  0xe2   :  { %v217_v54 = vsel %vm213_vm3, %v2695_v50, %v206_v42  ;;  %v184_v55 = vsel %vm180_vm2, %v2697_v51, %v173_v36 }
  0xe3   :  { %v234_v56 = vmul.f32 %v221_v45, %v217_v54  ;;  %v201_v57 = vmul.f32 %v188_v48, %v184_v55  ;;  %1715 = vmatprep.subr.bf16.mxu0 %v1714_v52  ;;  %v1705_v48 = vld [vmem:[#allocation7 + $0x28] ss:$0 sm:$0xff] }
  0xe5   :  { %v2712_v59 = vpop.permute.xlu1 %262  ;;  %v261_v60 = vpop.permute.xlu0 %260  ;;  %v1716_v61 = vpack.c.bf16 %v234_v56, %v201_v57  ;;  %v163_v56 = vrot.slane %v2768_v44, %v2624_v10  ;;  %v548_v57 = vld [vmem:[#allocation8 + $0x8] sm:$0xff] }
  0xe6   :  { %v268_v4 = vsel %vm266_vm4, %v261_v60, %v2712_v59 }
  0xe7   :  { %v288_v5 = vmul.f32 %v278_v58, %v268_v4  ;;  %1717 = vmatpush1.bf16.msra.mxu0 %v1716_v61  ;;  %v550_v58 = vld [vmem:[#allocation8 + $0x18] sm:$0xff]  ;;  %v130_v4 = vrot.slane %v2768_v44, %v2627_v11 }
  0xe9   :  { %v294_v7 = vpop.permute.xlu1 %293  ;;  %v2725_v13 = vpop.permute.xlu0 %258  ;;  %v1718_v14 = vpack.c.bf16 %v288_v5, %v255_v62  ;;  %v134_v5 = vrot.slane %v2771_v17, %v2627_v11 }
  0xea   :  { %v269_v15 = vsel %vm266_vm4, %v2725_v13, %v261_v60  ;;  %v547_v60 = vld [vmem:[#allocation8] sm:$0xff] }
  0xeb   :  { %v287_v16 = vmul.f32 %v274_v6, %v269_v15  ;;  %1719 = vmatprep.subr.bf16.mxu0 %v1718_v14  ;;  %v549_v6 = vld [vmem:[#allocation8 + $0x10] sm:$0xff]  ;;  %v554_v14 = vld [vmem:[#allocation8 + $0x38] sm:$0xff]  ;;  %v229_v15 = vrot.slane %v2768_v44, %v2667_v34 }
  0xed   :  { %v327_v22 = vpop.permute.xlu1 %326  ;;  %v2739_v23 = vpop.permute.xlu0 %295  ;;  %v1720_v24 = vpack.c.bf16 %v287_v16, %v254_v1  ;;  %v167_v16 = vrot.slane %v2771_v17, %v2624_v10 }
  0xee   :  { %v301_v8 = vsel %vm299_vm5, %v294_v7, %v2739_v23 }
  0xef   :  { %1721 = vmatpush1.bf16.msra.mxu0 %v1720_v24  ;;  %v321_v31 = vmul.f32 %v311_v0, %v301_v8  ;;  %v196_v24 = vrot.slane %v2768_v44, %v2664_v33  ;;  %v200_v0 = vrot.slane %v2771_v17, %v2664_v33 }
  0xf1   :  { %v2749_v28 = vpop.permute.xlu1 %291  ;;  %v2751_v29 = vpop.permute.xlu0 %328 }
  0xf2   :  { %v334_v30 = vsel %vm332_vm6, %v327_v22, %v2751_v29  ;;  %v302_v37 = vsel %vm299_vm5, %v2749_v28, %v294_v7  ;;  %v552_v7 = vld [vmem:[#allocation8 + $0x28] sm:$0xff] }
  0xf3   :  { %v354_v36 = vmul.f32 %v344_v25, %v334_v30  ;;  %v320_v45 = vmul.f32 %v307_v32, %v302_v37  ;;  %v1742_v25 = vpack.c.bf16 %v550_v58, %v548_v57  ;;  %v2799_v32 = vld [vmem:[#allocation5] sm:$0xff]  ;;  %v1746_v37 = vpack.c.bf16 %v554_v14, %v552_v7  ;;  %v555_v7 = vld [vmem:[#allocation8 + $0x40] sm:$0xff]  ;;  %v557_v14 = vld [vmem:[#allocation8 + $0x50] sm:$0xff] }
  0xf5   :  { %v360_v38 = vpop.permute.xlu1 %359  ;;  %v2763_v39 = vpop.permute.xlu0 %324  ;;  %v1722_v40 = vpack.c.bf16 %v354_v36, %v321_v31  ;;  %v282_v36 = vrot.slane %v2768_v44, %v2693_v49 }
  0xf6   :  { %v335_v42 = vsel %vm332_vm6, %v2763_v39, %v327_v22  ;;  %v233_v22 = vrot.slane %v2771_v17, %v2667_v34 }
  0xf7   :  { %v353_v46 = vmul.f32 %v340_v12, %v335_v42  ;;  %1723 = vmatprep.subr.bf16.mxu0 %v1722_v40  ;;  %v1744_v12 = vpack.c.bf16 %v549_v6, %v547_v60 }
  0xf9   :  { %v2773_v52 = vpop.permute.xlu1 %357  ;;  %v2775_v54 = vpop.permute.xlu0 %361  ;;  %v1724_v55 = vpack.c.bf16 %v353_v46, %v320_v45  ;;  %v553_v45 = vld [vmem:[#allocation8 + $0x30] sm:$0xff]  ;;  %v556_v46 = vld [vmem:[#allocation8 + $0x48] sm:$0xff] }
  0xfa   :  { %v368_v61 = vsel %vm365_vm7, %v2773_v52, %v360_v38  ;;  %v367_v62 = vsel %vm365_vm7, %v360_v38, %v2775_v54  ;;  %v551_v38 = vld [vmem:[#allocation8 + $0x20] sm:$0xff] }
  0xfb   :  { %v387_v1 = vmul.f32 %v1705_v48, %v367_v62  ;;  %1725 = vmatpush1.bf16.msra.mxu0 %v1724_v55  ;;  %v386_v8 = vmul.f32 %v1704_v47, %v368_v61  ;;  %v558_v47 = vld [vmem:[#allocation8 + $0x58] sm:$0xff]  ;;  %v1748_v62 = vpack.c.bf16 %v553_v45, %v551_v38  ;;  %v564_v45 = vld [vmem:[#allocation8 + $0x88] sm:$0xff] }
  0xfd   :  { %v144_v30 = vpop.permute.xlu1 %143  ;;  %v109_v31 = vpop.permute.xlu0 %108  ;;  %421 = vmatprep.subr.mxu0 %v387_v1 }
  0xfe   :  { %v148_v34 = vsel %vm147_vm0, %v144_v30, %v2653_v26  ;;  %v149_v33 = vsel %vm147_vm0, %v2639_v18, %v144_v30  ;;  %v115_v40 = vsel %vm114_vm1, %v109_v31, %v2655_v27  ;;  %v116_v42 = vsel %vm114_vm1, %v2641_v19, %v109_v31  ;;  %v562_v30 = vld [vmem:[#allocation8 + $0x78] sm:$0xff] }
  0xff   :  { %v170_v48 = vmul.f32 %v163_v56, %v149_v33  ;;  %v137_v55 = vmul.f32 %v130_v4, %v116_v42  ;;  %422 = vmatpush1.msra.mxu0 %v386_v8  ;;  %v138_v57 = vmul.f32 %v134_v5, %v115_v40  ;;  %v171_v26 = vmul.f32 %v167_v16, %v148_v34  ;;  %v559_v34 = vld [vmem:[#allocation8 + $0x60] sm:$0xff]  ;;  %v561_v33 = vld [vmem:[#allocation8 + $0x70] sm:$0xff] }
 0x100   :  { %1708 = vmatmul.mubr.msk.f32.vlgmr.msra.gmra.mrb[0].mxu0 %vm401_vm8, %v2799_v32  ;;  %v286_v18 = vrot.slane %v2771_v17, %v2693_v49  ;;  %v2821_v27 = vrot.slane %v2771_v17, %v2683_v43  ;;  %v2825_v19 = vrot.slane %v2768_v44, %v2683_v43  ;;  %1743 = vmatprep.subr.bf16.mxu0 %v1742_v25 }
 0x101   :  { %v210_v56 = vpop.permute.xlu1 %209  ;;  %v177_v58 = vpop.permute.xlu0 %176  ;;  %v1726_v60 = vpack.c.bf16 %v171_v26, %v138_v57  ;;  %v1728_v61 = vpack.c.bf16 %v170_v48, %v137_v55  ;;  %1745 = vmatpush1.bf16.msra.mxu0 %v1744_v12  ;;  %v1750_v4 = vpack.c.bf16 %v558_v47, %v556_v46  ;;  %v566_v46 = vld [vmem:[#allocation8 + $0x98] sm:$0xff]  ;;  %v563_v57 = vld [vmem:[#allocation8 + $0x80] sm:$0xff]  ;;  %v565_v26 = vld [vmem:[#allocation8 + $0x90] sm:$0xff] }
 0x102   :  { %v214_v49 = vsel %vm213_vm3, %v210_v56, %v2695_v50  ;;  %v215_v5 = vsel %vm213_vm3, %v2680_v41, %v210_v56  ;;  %v181_v43 = vsel %vm180_vm2, %v177_v58, %v2697_v51  ;;  %v182_v6 = vsel %vm180_vm2, %v2669_v35, %v177_v58  ;;  %1747 = vmatprep.subr.bf16.mxu0 %v1746_v37  ;;  %v560_v50 = vld [vmem:[#allocation8 + $0x68] sm:$0xff] }
 0x103   :  { %v236_v1 = vmul.f32 %v229_v15, %v215_v5  ;;  %v237_v16 = vmul.f32 %v233_v22, %v214_v49  ;;  %v203_v25 = vmul.f32 %v196_v24, %v182_v6  ;;  %v204_v8 = vmul.f32 %v200_v0, %v181_v43  ;;  %1727 = vmatprep.subr.bf16.mxu1 %v1726_v60  ;;  %v568_v60 = vld [vmem:[#allocation8 + $0xa8] sm:$0xff]  ;;  %v821_v6 = vld [vmem:[#allocation8 + $0x418] sm:$0xff] }
 0x104   :  { %1729 = vmatpush1.bf16.msra.mxu1 %v1728_v61  ;;  %v315_v41 = vrot.slane %v2768_v44, %v2733_v20  ;;  %v257_v51 = vmul.f32 %v2821_v27, %v2576_v2  ;;  %v256_v15 = vmul.f32 %v2825_v19, %v2591_v3  ;;  %v1752_v22 = vpack.c.bf16 %v557_v14, %v555_v7  ;;  %v570_v61 = vld [vmem:[#allocation8 + $0xb8] sm:$0xff]  ;;  %v819_v5 = vld [vmem:[#allocation8 + $0x408] sm:$0xff]  ;;  %v818_v7 = vld [vmem:[#allocation8 + $0x400] sm:$0xff] }
 0x105   :  { %v298_v31 = vpop.permute.xlu1 %297  ;;  %v265_v12 = vpop.permute.xlu0 %264  ;;  %v1730_v35 = vpack.c.bf16 %v237_v16, %v204_v8  ;;  %v1732_v37 = vpack.c.bf16 %v236_v1, %v203_v25  ;;  %1749 = vmatpush1.bf16.msra.mxu0 %v1748_v62  ;;  %v319_v24 = vrot.slane %v2771_v17, %v2733_v20  ;;  %v1754_v38 = vpack.c.bf16 %v562_v30, %v560_v50  ;;  %v1707_v62 = vld [vmem:[#allocation7 + $0x38] ss:$0 sm:$0xff]  ;;  %v820_v14 = vld [vmem:[#allocation8 + $0x410] sm:$0xff]  ;;  %v823_v8 = vld [vmem:[#allocation8 + $0x428] sm:$0xff] }
 0x106   :  { %v267_v0 = vsel %vm266_vm4, %v2712_v59, %v265_v12  ;;  %v270_v2 = vsel %vm266_vm4, %v265_v12, %v2725_v13  ;;  %1751 = vmatprep.subr.bf16.mxu0 %v1750_v4  ;;  %v348_v3 = vrot.slane %v2768_v44, %v2736_v21  ;;  %v352_v20 = vrot.slane %v2771_v17, %v2736_v21  ;;  %v1706_v4 = vld [vmem:[#allocation7 + $0x30] ss:$0 sm:$0xff]  ;;  %v825_v30 = vld [vmem:[#allocation8 + $0x438] sm:$0xff] }
 0x107   :  { %v289_v40 = vmul.f32 %v282_v36, %v267_v0  ;;  %v290_v42 = vmul.f32 %v286_v18, %v270_v2  ;;  %1731 = vmatprep.subr.bf16.mxu1 %v1730_v35  ;;  %v300_v59 = vsel %vm299_vm5, %v2739_v23, %v298_v31  ;;  %v303_v13 = vsel %vm299_vm5, %v298_v31, %v2749_v28  ;;  %v569_v50 = vld [vmem:[#allocation8 + $0xb0] sm:$0xff]  ;;  %v571_v0 = vld [vmem:[#allocation8 + $0xc0] sm:$0xff] }
 0x108   :  { %1733 = vmatpush1.bf16.msra.mxu1 %v1732_v37  ;;  %v1756_v44 = vpack.c.bf16 %v561_v33, %v559_v34  ;;  %v1758_v23 = vpack.c.bf16 %v566_v46, %v564_v45  ;;  %v322_v28 = vmul.f32 %v315_v41, %v300_v59  ;;  %v323_v18 = vmul.f32 %v319_v24, %v303_v13  ;;  %v572_v41 = vld [vmem:[#allocation8 + $0xc8] sm:$0xff]  ;;  %v822_v37 = vld [vmem:[#allocation8 + $0x420] sm:$0xff]  ;;  %v573_v2 = vld [vmem:[#allocation8 + $0xd0] sm:$0xff] }
 0x109   :  { %v364_v36 = vpop.permute.xlu1 %363  ;;  %v331_v47 = vpop.permute.xlu0 %330  ;;  %v1734_v48 = vpack.c.bf16 %v290_v42, %v257_v51  ;;  %v1736_v55 = vpack.c.bf16 %v289_v40, %v256_v15  ;;  %1753 = vmatpush1.bf16.msra.mxu0 %v1752_v22  ;;  %v1760_v43 = vpack.c.bf16 %v565_v26, %v563_v57  ;;  %v1762_v1 = vpack.c.bf16 %v570_v61, %v568_v60  ;;  %v574_v51 = vld [vmem:[#allocation8 + $0xd8] sm:$0xff]  ;;  %v824_v15 = vld [vmem:[#allocation8 + $0x430] sm:$0xff]  ;;  %v576_v34 = vld [vmem:[#allocation8 + $0xe8] sm:$0xff] }
 0x10a   :  { %v333_v21 = vsel %vm332_vm6, %v2751_v29, %v331_v47  ;;  %v336_v17 = vsel %vm332_vm6, %v331_v47, %v2763_v39  ;;  %1755 = vmatprep.subr.bf16.mxu0 %v1754_v38  ;;  %v369_v29 = vsel %vm365_vm7, %v364_v36, %v2773_v52  ;;  %v366_v16 = vsel %vm365_vm7, %v2775_v54, %v364_v36  ;;  %v567_v52 = vld [vmem:[#allocation8 + $0xa0] sm:$0xff]  ;;  %v827_v54 = vld [vmem:[#allocation8 + $0x448] sm:$0xff]  ;;  %v829_v38 = vld [vmem:[#allocation8 + $0x458] sm:$0xff] }
 0x10b   :  { %v355_v56 = vmul.f32 %v348_v3, %v333_v21  ;;  %v356_v58 = vmul.f32 %v352_v20, %v336_v17  ;;  %1735 = vmatprep.subr.bf16.mxu1 %v1734_v48  ;;  %v389_v25 = vmul.f32 %v1707_v62, %v369_v29  ;;  %v1870_v31 = vpack.c.bf16 %v821_v6, %v819_v5  ;;  %v578_v33 = vld [vmem:[#allocation8 + $0xf8] sm:$0xff]  ;;  %v826_v42 = vld [vmem:[#allocation8 + $0x440] sm:$0xff]  ;;  %v828_v3 = vld [vmem:[#allocation8 + $0x450] sm:$0xff] }
 0x10c   :  { %1737 = vmatpush1.bf16.msra.mxu1 %v1736_v55  ;;  %v388_v12 = vmul.f32 %v1706_v4, %v366_v16  ;;  %v1872_v35 = vpack.c.bf16 %v820_v14, %v818_v7  ;;  %v1764_v22 = vpack.c.bf16 %v569_v50, %v567_v52  ;;  %v1874_v9 = vpack.c.bf16 %v825_v30, %v823_v8  ;;  %v831_v46 = vld [vmem:[#allocation8 + $0x468] sm:$0xff]  ;;  %v575_v13 = vld [vmem:[#allocation8 + $0xe0] sm:$0xff]  ;;  %v577_v36 = vld [vmem:[#allocation8 + $0xf0] sm:$0xff] }
 0x10d   :  { %v1738_v49 = vpack.c.bf16 %v356_v58, %v323_v18  ;;  %v1740_v39 = vpack.c.bf16 %v355_v56, %v322_v28  ;;  %1757 = vmatpush1.bf16.msra.mxu0 %v1756_v44  ;;  %v1766_v24 = vpack.c.bf16 %v574_v51, %v572_v41  ;;  %v1876_v40 = vpack.c.bf16 %v824_v15, %v822_v37  ;;  %v833_v47 = vld [vmem:[#allocation8 + $0x478] sm:$0xff]  ;;  %v580_v48 = vld [vmem:[#allocation8 + $0x108] sm:$0xff]  ;;  %v832_v21 = vld [vmem:[#allocation8 + $0x470] sm:$0xff] }
 0x10e   :  { %1759 = vmatprep.subr.bf16.mxu0 %v1758_v23  ;;  %v1768_v20 = vpack.c.bf16 %v573_v2, %v571_v0  ;;  %v1878_v45 = vpack.c.bf16 %v829_v38, %v827_v54  ;;  %v1770_v59 = vpack.c.bf16 %v578_v33, %v576_v34  ;;  %v582_v55 = vld [vmem:[#allocation8 + $0x118] sm:$0xff]  ;;  %v1880_v44 = vpack.c.bf16 %v828_v3, %v826_v42  ;;  %v835_v57 = vld [vmem:[#allocation8 + $0x488] sm:$0xff]  ;;  %v579_v28 = vld [vmem:[#allocation8 + $0x100] sm:$0xff] }
 0x10f   :  { %1739 = vmatprep.subr.bf16.mxu1 %v1738_v49  ;;  %v1772_v17 = vpack.c.bf16 %v577_v36, %v575_v13  ;;  %v1882_v23 = vpack.c.bf16 %v833_v47, %v831_v46  ;;  %v1774_v26 = vpack.c.bf16 %v582_v55, %v580_v48  ;;  %v581_v18 = vld [vmem:[#allocation8 + $0x110] sm:$0xff]  ;;  %v837_v56 = vld [vmem:[#allocation8 + $0x498] sm:$0xff]  ;;  %v584_v58 = vld [vmem:[#allocation8 + $0x128] sm:$0xff] }
 0x110   :  { %1741 = vmatpush1.bf16.msra.mxu1 %v1740_v39  ;;  %v586_v60 = vld [vmem:[#allocation8 + $0x138] sm:$0xff]  ;;  %v834_v62 = vld [vmem:[#allocation8 + $0x480] sm:$0xff]  ;;  %v836_v29 = vld [vmem:[#allocation8 + $0x490] sm:$0xff]  ;;  %v1776_v4 = vpack.c.bf16 %v581_v18, %v579_v28  ;;  %v1886_v49 = vpack.c.bf16 %v837_v56, %v835_v57 }
 0x111   :  { %492 = vmatprep.subr.mxu1 %v389_v25  ;;  %1761 = vmatpush1.bf16.msra.mxu0 %v1760_v43  ;;  %v839_v39 = vld [vmem:[#allocation8 + $0x4a8] sm:$0xff]  ;;  %v1778_v5 = vpack.c.bf16 %v586_v60, %v584_v58  ;;  %v583_v43 = vld [vmem:[#allocation8 + $0x120] sm:$0xff]  ;;  %v585_v6 = vld [vmem:[#allocation8 + $0x130] sm:$0xff]  ;;  %v1888_v16 = vpack.c.bf16 %v836_v29, %v834_v62 }
 0x112   :  { %1763 = vmatprep.subr.bf16.mxu0 %v1762_v1  ;;  %v841_v7 = vld [vmem:[#allocation8 + $0x4b8] sm:$0xff]  ;;  %v588_v14 = vld [vmem:[#allocation8 + $0x148] sm:$0xff]  ;;  %v838_v25 = vld [vmem:[#allocation8 + $0x4a0] sm:$0xff]  ;;  %v1780_v52 = vpack.c.bf16 %v585_v6, %v583_v43 }
 0x113   :  { %v590_v1 = vld [vmem:[#allocation8 + $0x158] sm:$0xff]  ;;  %v840_v8 = vld [vmem:[#allocation8 + $0x4b0] sm:$0xff]  ;;  %v1890_v50 = vpack.c.bf16 %v841_v7, %v839_v39  ;;  %v843_v30 = vld [vmem:[#allocation8 + $0x4c8] sm:$0xff] }
 0x114   :  { %493 = vmatpush1.msra.mxu1 %v388_v12  ;;  %v1782_v41 = vpack.c.bf16 %v590_v1, %v588_v14  ;;  %v587_v51 = vld [vmem:[#allocation8 + $0x140] sm:$0xff]  ;;  %v845_v12 = vld [vmem:[#allocation8 + $0x4d8] sm:$0xff]  ;;  %v1892_v15 = vpack.c.bf16 %v840_v8, %v838_v25  ;;  %v847_v0 = vld [vmem:[#allocation8 + $0x4e8] sm:$0xff] }
 0x115   :  { %1709 = vmatmul.mubr.msk.f32.vlgmr.msra.gmra.mrb[0].mxu1 %vm401_vm8, %v2799_v32  ;;  %1871 = vmatprep.subr.bf16.mxu1 %v1870_v31  ;;  %v830_v32 = vld [vmem:[#allocation8 + $0x460] sm:$0xff]  ;;  %v589_v31 = vld [vmem:[#allocation8 + $0x150] sm:$0xff]  ;;  %v594_v37 = vld [vmem:[#allocation8 + $0x178] sm:$0xff] }
 0x116   :  { %1873 = vmatpush1.bf16.msra.mxu1 %v1872_v35  ;;  %1765 = vmatpush1.bf16.msra.mxu0 %v1764_v22  ;;  %v1884_v61 = vpack.c.bf16 %v832_v21, %v830_v32  ;;  %v592_v35 = vld [vmem:[#allocation8 + $0x168] sm:$0xff]  ;;  %v842_v22 = vld [vmem:[#allocation8 + $0x4c0] sm:$0xff]  ;;  %v1784_v54 = vpack.c.bf16 %v589_v31, %v587_v51  ;;  %v593_v34 = vld [vmem:[#allocation8 + $0x170] sm:$0xff] }
 0x117   :  { %1875 = vmatprep.subr.bf16.mxu1 %v1874_v9  ;;  %1767 = vmatprep.subr.bf16.mxu0 %v1766_v24  ;;  %v844_v9 = vld [vmem:[#allocation8 + $0x4d0] sm:$0xff]  ;;  %v1894_v24 = vpack.c.bf16 %v845_v12, %v843_v30  ;;  %v1786_v2 = vpack.c.bf16 %v594_v37, %v592_v35  ;;  %v591_v38 = vld [vmem:[#allocation8 + $0x160] sm:$0xff]  ;;  %v849_v33 = vld [vmem:[#allocation8 + $0x4f8] sm:$0xff] }
 0x118   :  { %v598_v42 = vld [vmem:[#allocation8 + $0x198] sm:$0xff]  ;;  %v1896_v3 = vpack.c.bf16 %v844_v9, %v842_v22  ;;  %v1788_v46 = vpack.c.bf16 %v593_v34, %v591_v38  ;;  %v851_v13 = vld [vmem:[#allocation8 + $0x508] sm:$0xff]  ;;  %v595_v47 = vld [vmem:[#allocation8 + $0x180] sm:$0xff] }
 0x119   :  { %v597_v48 = vld [vmem:[#allocation8 + $0x190] sm:$0xff]  ;;  %v853_v55 = vld [vmem:[#allocation8 + $0x518] sm:$0xff]  ;;  %v855_v28 = vld [vmem:[#allocation8 + $0x528] sm:$0xff] }
 0x11a   :  { %1877 = vmatpush1.bf16.msra.mxu1 %v1876_v40  ;;  %1769 = vmatpush1.bf16.msra.mxu0 %v1768_v20  ;;  %v596_v40 = vld [vmem:[#allocation8 + $0x188] sm:$0xff]  ;;  %v846_v20 = vld [vmem:[#allocation8 + $0x4e0] sm:$0xff]  ;;  %v602_v32 = vld [vmem:[#allocation8 + $0x1b8] sm:$0xff]  ;;  %v1792_v57 = vpack.c.bf16 %v597_v48, %v595_v47 }
 0x11b   :  { %1879 = vmatprep.subr.bf16.mxu1 %v1878_v45  ;;  %1771 = vmatprep.subr.bf16.mxu0 %v1770_v59  ;;  %v848_v45 = vld [vmem:[#allocation8 + $0x4f0] sm:$0xff]  ;;  %v1898_v59 = vpack.c.bf16 %v849_v33, %v847_v0  ;;  %v1790_v36 = vpack.c.bf16 %v598_v42, %v596_v40  ;;  %v599_v56 = vld [vmem:[#allocation8 + $0x1a0] sm:$0xff]  ;;  %v857_v60 = vld [vmem:[#allocation8 + $0x538] sm:$0xff] }
 0x11c   :  { %v1900_v21 = vpack.c.bf16 %v848_v45, %v846_v20  ;;  %v601_v58 = vld [vmem:[#allocation8 + $0x1b0] sm:$0xff]  ;;  %v606_v62 = vld [vmem:[#allocation8 + $0x1d8] sm:$0xff]  ;;  %v1906_v39 = vpack.c.bf16 %v857_v60, %v855_v28  ;;  %v603_v6 = vld [vmem:[#allocation8 + $0x1c0] sm:$0xff] }
 0x11d   :  { %v605_v7 = vld [vmem:[#allocation8 + $0x1d0] sm:$0xff]  ;;  %v859_v14 = vld [vmem:[#allocation8 + $0x548] sm:$0xff]  ;;  %v861_v1 = vld [vmem:[#allocation8 + $0x558] sm:$0xff] }
 0x11e   :  { %1881 = vmatpush1.bf16.msra.mxu1 %v1880_v44  ;;  %1773 = vmatpush1.bf16.msra.mxu0 %v1772_v17  ;;  %v600_v44 = vld [vmem:[#allocation8 + $0x1a8] sm:$0xff]  ;;  %v850_v17 = vld [vmem:[#allocation8 + $0x500] sm:$0xff]  ;;  %v1800_v25 = vpack.c.bf16 %v605_v7, %v603_v6  ;;  %v1910_v8 = vpack.c.bf16 %v861_v1, %v859_v14  ;;  %v864_v35 = vld [vmem:[#allocation8 + $0x570] sm:$0xff] }
 0x11f   :  { %1883 = vmatprep.subr.bf16.mxu1 %v1882_v23  ;;  %1775 = vmatprep.subr.bf16.mxu0 %v1774_v26  ;;  %v852_v23 = vld [vmem:[#allocation8 + $0x510] sm:$0xff]  ;;  %v1902_v26 = vpack.c.bf16 %v853_v55, %v851_v13  ;;  %v1794_v18 = vpack.c.bf16 %v602_v32, %v600_v44  ;;  %v863_v30 = vld [vmem:[#allocation8 + $0x568] sm:$0xff]  ;;  %v862_v12 = vld [vmem:[#allocation8 + $0x560] sm:$0xff] }
 0x120   :  { %v1904_v29 = vpack.c.bf16 %v852_v23, %v850_v17  ;;  %v867_v37 = vld [vmem:[#allocation8 + $0x588] sm:$0xff]  ;;  %v1916_v22 = vpack.c.bf16 %v864_v35, %v862_v12  ;;  %v870_v33 = vld [vmem:[#allocation8 + $0x5a0] sm:$0xff]  ;;  %v872_v40 = vld [vmem:[#allocation8 + $0x5b0] sm:$0xff] }
 0x121   :  { %v871_v0 = vld [vmem:[#allocation8 + $0x5a8] sm:$0xff]  ;;  %v1924_v20 = vpack.c.bf16 %v872_v40, %v870_v33  ;;  %v610_v47 = vld [vmem:[#allocation8 + $0x1f8] sm:$0xff]  ;;  %v607_v32 = vld [vmem:[#allocation8 + $0x1e0] sm:$0xff] }
 0x122   :  { %1885 = vmatpush1.bf16.msra.mxu1 %v1884_v61  ;;  %1777 = vmatpush1.bf16.msra.mxu0 %v1776_v4  ;;  %v604_v61 = vld [vmem:[#allocation8 + $0x1c8] sm:$0xff]  ;;  %v854_v4 = vld [vmem:[#allocation8 + $0x520] sm:$0xff]  ;;  %v881_v44 = vld [vmem:[#allocation8 + $0x5f8] sm:$0xff] }
 0x123   :  { %1887 = vmatprep.subr.bf16.mxu1 %v1886_v49  ;;  %1779 = vmatprep.subr.bf16.mxu0 %v1778_v5  ;;  %v1796_v49 = vpack.c.bf16 %v601_v58, %v599_v56  ;;  %v856_v5 = vld [vmem:[#allocation8 + $0x530] sm:$0xff]  ;;  %v1798_v43 = vpack.c.bf16 %v606_v62, %v604_v61  ;;  %v875_v42 = vld [vmem:[#allocation8 + $0x5c8] sm:$0xff]  ;;  %v614_v56 = vld [vmem:[#allocation8 + $0x218] sm:$0xff] }
 0x124   :  { %v879_v48 = vld [vmem:[#allocation8 + $0x5e8] sm:$0xff]  ;;  %v885_v61 = vld [vmem:[#allocation8 + $0x618] sm:$0xff]  ;;  %v884_v6 = vld [vmem:[#allocation8 + $0x610] sm:$0xff] }
 0x125   :  { %v1930_v17 = vpack.c.bf16 %v881_v44, %v879_v48  ;;  %v883_v58 = vld [vmem:[#allocation8 + $0x608] sm:$0xff]  ;;  %v618_v1 = vld [vmem:[#allocation8 + $0x238] sm:$0xff]  ;;  %v886_v35 = vld [vmem:[#allocation8 + $0x620] sm:$0xff] }
 0x126   :  { %1889 = vmatpush1.bf16.msra.mxu1 %v1888_v16  ;;  %1781 = vmatpush1.bf16.msra.mxu0 %v1780_v52  ;;  %v1908_v16 = vpack.c.bf16 %v856_v5, %v854_v4  ;;  %v858_v52 = vld [vmem:[#allocation8 + $0x540] sm:$0xff]  ;;  %v1934_v62 = vpack.c.bf16 %v885_v61, %v883_v58  ;;  %v616_v7 = vld [vmem:[#allocation8 + $0x228] sm:$0xff]  ;;  %v892_v40 = vld [vmem:[#allocation8 + $0x650] sm:$0xff] }
 0x127   :  { %1891 = vmatprep.subr.bf16.mxu1 %v1890_v50  ;;  %1783 = vmatprep.subr.bf16.mxu0 %v1782_v41  ;;  %v860_v50 = vld [vmem:[#allocation8 + $0x550] sm:$0xff]  ;;  %v865_v41 = vld [vmem:[#allocation8 + $0x578] sm:$0xff]  ;;  %v890_v33 = vld [vmem:[#allocation8 + $0x640] sm:$0xff] }
 0x128   :  { %v1912_v51 = vpack.c.bf16 %v860_v50, %v858_v52  ;;  %v1914_v31 = vpack.c.bf16 %v865_v41, %v863_v30  ;;  %v615_v41 = vld [vmem:[#allocation8 + $0x220] sm:$0xff]  ;;  %v896_v44 = vld [vmem:[#allocation8 + $0x670] sm:$0xff] }
 0x129   :  { %v900_v61 = vld [vmem:[#allocation8 + $0x690] sm:$0xff] }
 0x12a   :  { %1893 = vmatpush1.bf16.msra.mxu1 %v1892_v15  ;;  %1785 = vmatpush1.bf16.msra.mxu0 %v1784_v54  ;;  %v869_v15 = vld [vmem:[#allocation8 + $0x598] sm:$0xff]  ;;  %v866_v54 = vld [vmem:[#allocation8 + $0x580] sm:$0xff] }
 0x12b   :  { %1895 = vmatprep.subr.bf16.mxu1 %v1894_v24  ;;  %1787 = vmatprep.subr.bf16.mxu0 %v1786_v2  ;;  %v1918_v9 = vpack.c.bf16 %v869_v15, %v867_v37  ;;  %v868_v24 = vld [vmem:[#allocation8 + $0x590] sm:$0xff]  ;;  %v873_v2 = vld [vmem:[#allocation8 + $0x5b8] sm:$0xff]  ;;  %v620_v37 = vld [vmem:[#allocation8 + $0x248] sm:$0xff] }
 0x12c   :  { %v1920_v38 = vpack.c.bf16 %v868_v24, %v866_v54  ;;  %v1922_v34 = vpack.c.bf16 %v873_v2, %v871_v0  ;;  %v622_v15 = vld [vmem:[#allocation8 + $0x258] sm:$0xff]  ;;  %v619_v0 = vld [vmem:[#allocation8 + $0x240] sm:$0xff]  ;;  %v621_v2 = vld [vmem:[#allocation8 + $0x250] sm:$0xff] }
 0x12e   :  { %1897 = vmatpush1.bf16.msra.mxu1 %v1896_v3  ;;  %1789 = vmatpush1.bf16.msra.mxu0 %v1788_v46  ;;  %v877_v3 = vld [vmem:[#allocation8 + $0x5d8] sm:$0xff]  ;;  %v874_v46 = vld [vmem:[#allocation8 + $0x5c0] sm:$0xff] }
 0x12f   :  { %1899 = vmatprep.subr.bf16.mxu1 %v1898_v59  ;;  %1791 = vmatprep.subr.bf16.mxu0 %v1790_v36  ;;  %v1926_v45 = vpack.c.bf16 %v877_v3, %v875_v42  ;;  %v876_v59 = vld [vmem:[#allocation8 + $0x5d0] sm:$0xff]  ;;  %v608_v36 = vld [vmem:[#allocation8 + $0x1e8] sm:$0xff]  ;;  %v626_v3 = vld [vmem:[#allocation8 + $0x278] sm:$0xff] }
 0x130   :  { %v1928_v13 = vpack.c.bf16 %v876_v59, %v874_v46  ;;  %v1802_v55 = vpack.c.bf16 %v610_v47, %v608_v36  ;;  %v624_v42 = vld [vmem:[#allocation8 + $0x268] sm:$0xff]  ;;  %v1816_v46 = vpack.c.bf16 %v621_v2, %v619_v0  ;;  %v1944_v59 = vpack.c.bf16 %v892_v40, %v890_v33  ;;  %v625_v36 = vld [vmem:[#allocation8 + $0x270] sm:$0xff]  ;;  %v913_v33 = vld [vmem:[#allocation8 + $0x6f8] sm:$0xff] }
 0x131   :  { %v1818_v47 = vpack.c.bf16 %v626_v3, %v624_v42  ;;  %v908_v0 = vld [vmem:[#allocation8 + $0x6d0] sm:$0xff]  ;;  %v640_v2 = vld [vmem:[#allocation8 + $0x2e8] sm:$0xff]  ;;  %v639_v42 = vld [vmem:[#allocation8 + $0x2e0] sm:$0xff] }
 0x132   :  { %1901 = vmatpush1.bf16.msra.mxu1 %v1900_v21  ;;  %1793 = vmatpush1.bf16.msra.mxu0 %v1792_v57  ;;  %v609_v21 = vld [vmem:[#allocation8 + $0x1f0] sm:$0xff]  ;;  %v878_v57 = vld [vmem:[#allocation8 + $0x5e0] sm:$0xff] }
 0x133   :  { %1903 = vmatprep.subr.bf16.mxu1 %v1902_v26  ;;  %1795 = vmatprep.subr.bf16.mxu0 %v1794_v18  ;;  %v1804_v23 = vpack.c.bf16 %v609_v21, %v607_v32  ;;  %v880_v26 = vld [vmem:[#allocation8 + $0x5f0] sm:$0xff]  ;;  %v612_v18 = vld [vmem:[#allocation8 + $0x208] sm:$0xff]  ;;  %v630_v21 = vld [vmem:[#allocation8 + $0x298] sm:$0xff] }
 0x134   :  { %v1932_v28 = vpack.c.bf16 %v880_v26, %v878_v57  ;;  %v1806_v60 = vpack.c.bf16 %v614_v56, %v612_v18  ;;  %v628_v32 = vld [vmem:[#allocation8 + $0x288] sm:$0xff]  ;;  %v629_v18 = vld [vmem:[#allocation8 + $0x290] sm:$0xff] }
 0x135   :  { %v1822_v56 = vpack.c.bf16 %v630_v21, %v628_v32  ;;  %v641_v3 = vld [vmem:[#allocation8 + $0x2f0] sm:$0xff]  ;;  %v643_v32 = vld [vmem:[#allocation8 + $0x300] sm:$0xff] }
 0x136   :  { %1905 = vmatpush1.bf16.msra.mxu1 %v1904_v29  ;;  %1797 = vmatpush1.bf16.msra.mxu0 %v1796_v49  ;;  %v2877_v29 = vpop.permute.xlu0 %394  ;;  %v611_v49 = vld [vmem:[#allocation8 + $0x200] sm:$0xff]  ;;  %v645_v21 = vld [vmem:[#allocation8 + $0x310] sm:$0xff] }
 0x137   :  { %1907 = vmatprep.subr.bf16.mxu1 %v1906_v39  ;;  %1799 = vmatprep.subr.bf16.mxu0 %v1798_v43  ;;  %v398_v4 = vmul.f32 %v2877_v29, %v2701_v53  ;;  %v613_v39 = vld [vmem:[#allocation8 + $0x210] sm:$0xff]  ;;  %v397_v5 = vmul.f32 %v2877_v29, %v2718_v63  ;;  %v882_v43 = vld [vmem:[#allocation8 + $0x600] sm:$0xff] }
 0x138   :  { %v1808_v50 = vpack.c.bf16 %v613_v39, %v611_v49  ;;  %v1936_v30 = vpack.c.bf16 %v884_v6, %v882_v43  ;;  %v888_v63 = vld [vmem:[#allocation8 + $0x630] sm:$0xff]  ;;  %v903_v49 = vld [vmem:[#allocation8 + $0x6a8] sm:$0xff]  ;;  %v905_v39 = vld [vmem:[#allocation8 + $0x6b8] sm:$0xff] }
 0x139   :  { %v1940_v24 = vpack.c.bf16 %v888_v63, %v886_v35  ;;  %v631_v6 = vld [vmem:[#allocation8 + $0x2a0] sm:$0xff] }
 0x13a   :  { %1909 = vmatpush1.bf16.msra.mxu1 %v1908_v16  ;;  %1801 = vmatpush1.bf16.msra.mxu0 %v1800_v25  ;;  %v887_v16 = vld [vmem:[#allocation8 + $0x628] sm:$0xff]  ;;  %v889_v25 = vld [vmem:[#allocation8 + $0x638] sm:$0xff] }
 0x13b   :  { %1911 = vmatprep.subr.bf16.mxu1 %v1910_v8  ;;  %1803 = vmatprep.subr.bf16.mxu0 %v1802_v55  ;;  %v1938_v12 = vpack.c.bf16 %v889_v25, %v887_v16  ;;  %v894_v55 = vld [vmem:[#allocation8 + $0x660] sm:$0xff]  ;;  %v904_v25 = vld [vmem:[#allocation8 + $0x6b0] sm:$0xff] }
 0x13c   :  { %v1948_v26 = vpack.c.bf16 %v896_v44, %v894_v55  ;;  %v902_v16 = vld [vmem:[#allocation8 + $0x6a0] sm:$0xff]  ;;  %v1836_v55 = vpack.c.bf16 %v641_v3, %v639_v42  ;;  %v931_v42 = vld [vmem:[#allocation8 + $0x788] sm:$0xff]  ;;  %v933_v3 = vld [vmem:[#allocation8 + $0x798] sm:$0xff] }
 0x13d   :  { %v1956_v63 = vpack.c.bf16 %v904_v25, %v902_v16 }
 0x13e   :  { %1913 = vmatpush1.bf16.msra.mxu1 %v1912_v51  ;;  %1805 = vmatpush1.bf16.msra.mxu0 %v1804_v23  ;;  %v617_v51 = vld [vmem:[#allocation8 + $0x230] sm:$0xff]  ;;  %v901_v23 = vld [vmem:[#allocation8 + $0x698] sm:$0xff] }
 0x13f   :  { %1915 = vmatprep.subr.bf16.mxu1 %v1914_v31  ;;  %1807 = vmatprep.subr.bf16.mxu0 %v1806_v60  ;;  %v1810_v31 = vpack.c.bf16 %v618_v1, %v616_v7  ;;  %v1812_v54 = vpack.c.bf16 %v617_v51, %v615_v41  ;;  %v898_v60 = vld [vmem:[#allocation8 + $0x680] sm:$0xff]  ;;  %v633_v7 = vld [vmem:[#allocation8 + $0x2b0] sm:$0xff]  ;;  %v1954_v1 = vpack.c.bf16 %v905_v39, %v903_v49  ;;  %v909_v41 = vld [vmem:[#allocation8 + $0x6d8] sm:$0xff] }
 0x140   :  { %v1952_v43 = vpack.c.bf16 %v900_v61, %v898_v60  ;;  %v1828_v35 = vpack.c.bf16 %v633_v7, %v631_v6  ;;  %v1840_v60 = vpack.c.bf16 %v645_v21, %v643_v32  ;;  %v652_v6 = vld [vmem:[#allocation8 + $0x348] sm:$0xff]  ;;  %v654_v7 = vld [vmem:[#allocation8 + $0x358] sm:$0xff] }
 0x141   :  { %v935_v32 = vld [vmem:[#allocation8 + $0x7a8] sm:$0xff]  ;;  %v937_v21 = vld [vmem:[#allocation8 + $0x7b8] sm:$0xff] }
 0x142   :  { %1917 = vmatpush1.bf16.msra.mxu1 %v1916_v22  ;;  %v891_v22 = vld [vmem:[#allocation8 + $0x648] sm:$0xff] }
 0x143   :  { %1919 = vmatprep.subr.bf16.mxu1 %v1918_v9  ;;  %v893_v9 = vld [vmem:[#allocation8 + $0x658] sm:$0xff] }
 0x146   :  { %1921 = vmatpush1.bf16.msra.mxu1 %v1920_v38  ;;  %v1814_v38 = vpack.c.bf16 %v622_v15, %v620_v37  ;;  %v635_v37 = vld [vmem:[#allocation8 + $0x2c0] sm:$0xff]  ;;  %v637_v15 = vld [vmem:[#allocation8 + $0x2d0] sm:$0xff] }
 0x147   :  { %1923 = vmatprep.subr.bf16.mxu1 %v1922_v34  ;;  %v1942_v34 = vpack.c.bf16 %v893_v9, %v891_v22 }
 0x14a   :  { %1925 = vmatpush1.bf16.msra.mxu1 %v1924_v20  ;;  %v895_v20 = vld [vmem:[#allocation8 + $0x668] sm:$0xff] }
 0x14b   :  { %1927 = vmatprep.subr.bf16.mxu1 %v1926_v45  ;;  %v897_v45 = vld [vmem:[#allocation8 + $0x678] sm:$0xff] }
 0x14c   :  { %v1946_v48 = vpack.c.bf16 %v897_v45, %v895_v20 }
 0x14e   :  { %1929 = vmatpush1.bf16.msra.mxu1 %v1928_v13  ;;  %v623_v13 = vld [vmem:[#allocation8 + $0x260] sm:$0xff] }
 0x14f   :  { %1931 = vmatprep.subr.bf16.mxu1 %v1930_v17  ;;  %v899_v17 = vld [vmem:[#allocation8 + $0x688] sm:$0xff]  ;;  %v1820_v57 = vpack.c.bf16 %v625_v36, %v623_v13  ;;  %v646_v36 = vld [vmem:[#allocation8 + $0x318] sm:$0xff] }
 0x150   :  { %v1950_v58 = vpack.c.bf16 %v901_v23, %v899_v17  ;;  %v644_v13 = vld [vmem:[#allocation8 + $0x308] sm:$0xff] }
 0x151   :  { %v1838_v17 = vpack.c.bf16 %v646_v36, %v644_v13  ;;  %v1982_v36 = vpack.c.bf16 %v933_v3, %v931_v42  ;;  %v1360_v42 = vld [vmem:[#allocation8 + $0xc00] sm:$0xff]  ;;  %v1362_v3 = vld [vmem:[#allocation8 + $0xc10] sm:$0xff] }
 0x152   :  { %1933 = vmatpush1.bf16.msra.mxu1 %v1932_v28  ;;  %v627_v28 = vld [vmem:[#allocation8 + $0x280] sm:$0xff] }
 0x153   :  { %1935 = vmatprep.subr.bf16.mxu1 %v1934_v62  ;;  %v632_v62 = vld [vmem:[#allocation8 + $0x2a8] sm:$0xff] }
 0x1d3   :  { %v471_v14 = vpop.f32.mrb[0].mxu0 }
 0x1d4   :  { %v473_v8 = vpop.f32.mrb[1].mxu0  ;;  %v2885_v53 = vadd.f32 %v471_v14, %v397_v5  ;;  %v1824_v5 = vpack.c.bf16 %v629_v18, %v627_v28  ;;  %v648_v28 = vld [vmem:[#allocation8 + $0x328] sm:$0xff]  ;;  %v650_v18 = vld [vmem:[#allocation8 + $0x338] sm:$0xff] }
 0x1d5   :  { %v2883_v52 = vadd.f32 %v473_v8, %v398_v4  ;;  %v634_v4 = vld [vmem:[#allocation8 + $0x2b8] sm:$0xff]  ;;  %v636_v8 = vld [vmem:[#allocation8 + $0x2c8] sm:$0xff]  ;;  %v1842_v49 = vpack.c.bf16 %v650_v18, %v648_v28  ;;  %v1986_v18 = vpack.c.bf16 %v937_v21, %v935_v32  ;;  %v1364_v32 = vld [vmem:[#allocation8 + $0xc20] sm:$0xff] }
 0x1d6   :  { %v1826_v14 = vpack.c.bf16 %v634_v4, %v632_v62  ;;  %v647_v62 = vld [vmem:[#allocation8 + $0x320] sm:$0xff]  ;;  %v649_v4 = vld [vmem:[#allocation8 + $0x330] sm:$0xff] }
 0x1d7   :  { %739 = vmatprep.mubr.f32.mxu0 %v2883_v52  ;;  %1010 = vmatprep.mubr.f32.mxu1 %v2883_v52  ;;  %v1844_v16 = vpack.c.bf16 %v649_v4, %v647_v62  ;;  %v939_v62 = vld [vmem:[#allocation8 + $0x7c8] sm:$0xff]  ;;  %v941_v4 = vld [vmem:[#allocation8 + $0x7d8] sm:$0xff] }
 0x1d8   :  { %740 = vmatmul.mubr.f32.vlgmr.msra.gmra.mrb[2].mxu0 %v2885_v53  ;;  %1011 = vmatmul.mubr.f32.vlgmr.msra.gmra.mrb[2].mxu1 %v2885_v53 }
 0x1d9   :  { %1809 = vmatpush1.bf16.msra.mxu0 %v1808_v50  ;;  %1937 = vmatpush1.bf16.msra.mxu1 %v1936_v30  ;;  %v638_v50 = vld [vmem:[#allocation8 + $0x2d8] sm:$0xff]  ;;  %v907_v30 = vld [vmem:[#allocation8 + $0x6c8] sm:$0xff] }
 0x1da   :  { %1811 = vmatprep.subr.bf16.mxu0 %v1810_v31  ;;  %1939 = vmatprep.subr.bf16.mxu1 %v1938_v12  ;;  %v400_v31 = vmul.f32 %v2877_v29, %v2821_v27  ;;  %v1830_v9 = vpack.c.bf16 %v638_v50, %v636_v8  ;;  %v1832_v27 = vpack.c.bf16 %v637_v15, %v635_v37  ;;  %v651_v8 = vld [vmem:[#allocation8 + $0x340] sm:$0xff]  ;;  %v653_v50 = vld [vmem:[#allocation8 + $0x350] sm:$0xff]  ;;  %v927_v37 = vld [vmem:[#allocation8 + $0x768] sm:$0xff] }
 0x1db   :  { %v929_v15 = vld [vmem:[#allocation8 + $0x778] sm:$0xff] }
 0x1dd   :  { %1813 = vmatpush1.bf16.msra.mxu0 %v1812_v54  ;;  %1941 = vmatpush1.bf16.msra.mxu1 %v1940_v24  ;;  %v1958_v54 = vpack.c.bf16 %v909_v41, %v907_v30  ;;  %v906_v24 = vld [vmem:[#allocation8 + $0x6c0] sm:$0xff]  ;;  %v1846_v30 = vpack.c.bf16 %v654_v7, %v652_v6  ;;  %v1990_v7 = vpack.c.bf16 %v941_v4, %v939_v62  ;;  %v1370_v62 = vld [vmem:[#allocation8 + $0xc50] sm:$0xff]  ;;  %v1102_v4 = vld [vmem:[#allocation8 + $0x868] sm:$0xff] }
 0x1de   :  { %1815 = vmatprep.subr.bf16.mxu0 %v1814_v38  ;;  %1943 = vmatprep.subr.bf16.mxu1 %v1942_v34  ;;  %v642_v38 = vld [vmem:[#allocation8 + $0x2f8] sm:$0xff]  ;;  %v911_v34 = vld [vmem:[#allocation8 + $0x6e8] sm:$0xff]  ;;  %v1960_v40 = vpack.c.bf16 %v908_v0, %v906_v24  ;;  %v655_v24 = vld [vmem:[#allocation8 + $0x360] sm:$0xff] }
 0x1df   :  { %v1834_v20 = vpack.c.bf16 %v642_v38, %v640_v2  ;;  %v1962_v45 = vpack.c.bf16 %v913_v33, %v911_v34  ;;  %v657_v0 = vld [vmem:[#allocation8 + $0x370] sm:$0xff]  ;;  %v1978_v38 = vpack.c.bf16 %v929_v15, %v927_v37  ;;  %v926_v34 = vld [vmem:[#allocation8 + $0x760] sm:$0xff] }
 0x1e0   :  { %v928_v33 = vld [vmem:[#allocation8 + $0x770] sm:$0xff]  ;;  %v942_v37 = vld [vmem:[#allocation8 + $0x7e0] sm:$0xff] }
 0x1e1   :  { %1817 = vmatpush1.bf16.msra.mxu0 %v1816_v46  ;;  %1945 = vmatpush1.bf16.msra.mxu1 %v1944_v59  ;;  %v910_v46 = vld [vmem:[#allocation8 + $0x6e0] sm:$0xff]  ;;  %v912_v59 = vld [vmem:[#allocation8 + $0x6f0] sm:$0xff] }
 0x1e2   :  { %1819 = vmatprep.subr.bf16.mxu0 %v1818_v47  ;;  %1947 = vmatprep.subr.bf16.mxu1 %v1946_v48  ;;  %v915_v47 = vld [vmem:[#allocation8 + $0x708] sm:$0xff]  ;;  %v917_v48 = vld [vmem:[#allocation8 + $0x718] sm:$0xff]  ;;  %v1964_v44 = vpack.c.bf16 %v912_v59, %v910_v46  ;;  %v659_v46 = vld [vmem:[#allocation8 + $0x380] sm:$0xff] }
 0x1e3   :  { %v1966_v23 = vpack.c.bf16 %v917_v48, %v915_v47  ;;  %v661_v59 = vld [vmem:[#allocation8 + $0x390] sm:$0xff]  ;;  %v930_v47 = vld [vmem:[#allocation8 + $0x780] sm:$0xff] }
 0x1e4   :  { %v932_v48 = vld [vmem:[#allocation8 + $0x790] sm:$0xff] }
 0x1e5   :  { %1821 = vmatpush1.bf16.msra.mxu0 %v1820_v57  ;;  %1949 = vmatpush1.bf16.msra.mxu1 %v1948_v26  ;;  %v914_v57 = vld [vmem:[#allocation8 + $0x700] sm:$0xff]  ;;  %v916_v26 = vld [vmem:[#allocation8 + $0x710] sm:$0xff] }
 0x1e6   :  { %1823 = vmatprep.subr.bf16.mxu0 %v1822_v56  ;;  %1951 = vmatprep.subr.bf16.mxu1 %v1950_v58  ;;  %v919_v56 = vld [vmem:[#allocation8 + $0x728] sm:$0xff]  ;;  %v921_v58 = vld [vmem:[#allocation8 + $0x738] sm:$0xff]  ;;  %v1968_v61 = vpack.c.bf16 %v916_v26, %v914_v57  ;;  %v663_v57 = vld [vmem:[#allocation8 + $0x3a0] sm:$0xff] }
 0x1e7   :  { %v1970_v39 = vpack.c.bf16 %v921_v58, %v919_v56  ;;  %v665_v26 = vld [vmem:[#allocation8 + $0x3b0] sm:$0xff]  ;;  %v934_v56 = vld [vmem:[#allocation8 + $0x7a0] sm:$0xff] }
 0x1e8   :  { %v2891_v51 = vpop.f32.mrb[0].mxu1  ;;  %v936_v58 = vld [vmem:[#allocation8 + $0x7b0] sm:$0xff] }
 0x1e9   :  { %1825 = vmatpush1.bf16.msra.mxu0 %v1824_v5  ;;  %1953 = vmatpush1.bf16.msra.mxu1 %v1952_v43  ;;  %v544_v12 = vpop.f32.mrb[1].mxu1  ;;  %v918_v5 = vld [vmem:[#allocation8 + $0x720] sm:$0xff]  ;;  %v920_v43 = vld [vmem:[#allocation8 + $0x730] sm:$0xff] }
 0x1ea   :  { %v2895_v22 = vadd.f32 %v544_v12, %v400_v31  ;;  %1827 = vmatprep.subr.bf16.mxu0 %v1826_v14  ;;  %1955 = vmatprep.subr.bf16.mxu1 %v1954_v1  ;;  %v923_v14 = vld [vmem:[#allocation8 + $0x748] sm:$0xff]  ;;  %v925_v1 = vld [vmem:[#allocation8 + $0x758] sm:$0xff]  ;;  %v1972_v25 = vpack.c.bf16 %v920_v43, %v918_v5  ;;  %v922_v31 = vld [vmem:[#allocation8 + $0x740] sm:$0xff] }
 0x1eb   :  { %v1974_v41 = vpack.c.bf16 %v925_v1, %v923_v14  ;;  %v924_v12 = vld [vmem:[#allocation8 + $0x750] sm:$0xff]  ;;  %v667_v5 = vld [vmem:[#allocation8 + $0x3c0] sm:$0xff] }
 0x1ec   :  { %810 = vmatprep.mubr.f32.mxu0 %v2895_v22  ;;  %1081 = vmatprep.mubr.f32.mxu1 %v2895_v22  ;;  %v669_v43 = vld [vmem:[#allocation8 + $0x3d0] sm:$0xff]  ;;  %v938_v14 = vld [vmem:[#allocation8 + $0x7c0] sm:$0xff] }
 0x1ed   :  { %1829 = vmatpush1.bf16.msra.mxu0 %v1828_v35  ;;  %1957 = vmatpush1.bf16.msra.mxu1 %v1956_v63  ;;  %v656_v35 = vld [vmem:[#allocation8 + $0x368] sm:$0xff]  ;;  %v658_v63 = vld [vmem:[#allocation8 + $0x378] sm:$0xff]  ;;  %v940_v1 = vld [vmem:[#allocation8 + $0x7d0] sm:$0xff] }
 0x1ee   :  { %1831 = vmatprep.subr.bf16.mxu0 %v1830_v9  ;;  %1959 = vmatprep.subr.bf16.mxu1 %v1958_v54  ;;  %v1848_v9 = vpack.c.bf16 %v653_v50, %v651_v8  ;;  %v1976_v54 = vpack.c.bf16 %v924_v12, %v922_v31  ;;  %v1850_v2 = vpack.c.bf16 %v658_v63, %v656_v35  ;;  %v943_v8 = vld [vmem:[#allocation8 + $0x7e8] sm:$0xff]  ;;  %v945_v50 = vld [vmem:[#allocation8 + $0x7f8] sm:$0xff]  ;;  %v671_v31 = vld [vmem:[#allocation8 + $0x3e0] sm:$0xff] }
 0x1ef   :  { %v673_v12 = vld [vmem:[#allocation8 + $0x3f0] sm:$0xff]  ;;  %v1994_v63 = vpack.c.bf16 %v945_v50, %v943_v8  ;;  %v1106_v8 = vld [vmem:[#allocation8 + $0x888] sm:$0xff]  ;;  %v1108_v50 = vld [vmem:[#allocation8 + $0x898] sm:$0xff] }
 0x1f0   :  { %v944_v15 = vld [vmem:[#allocation8 + $0x7f0] sm:$0xff] }
 0x1f1   :  { %1833 = vmatpush1.bf16.msra.mxu0 %v1832_v27  ;;  %1961 = vmatpush1.bf16.msra.mxu1 %v1960_v40  ;;  %v660_v27 = vld [vmem:[#allocation8 + $0x388] sm:$0xff]  ;;  %v662_v40 = vld [vmem:[#allocation8 + $0x398] sm:$0xff] }
 0x1f2   :  { %1835 = vmatprep.subr.bf16.mxu0 %v1834_v20  ;;  %1963 = vmatprep.subr.bf16.mxu1 %v1962_v45  ;;  %v1852_v20 = vpack.c.bf16 %v657_v0, %v655_v24  ;;  %v1980_v45 = vpack.c.bf16 %v928_v33, %v926_v34  ;;  %v1854_v13 = vpack.c.bf16 %v662_v40, %v660_v27  ;;  %v1361_v24 = vld [vmem:[#allocation8 + $0xc08] sm:$0xff]  ;;  %v1363_v0 = vld [vmem:[#allocation8 + $0xc18] sm:$0xff]  ;;  %v1089_v27 = vld [vmem:[#allocation8 + $0x800] sm:$0xff] }
 0x1f3   :  { %v2126_v33 = vpack.c.bf16 %v1363_v0, %v1361_v24  ;;  %v1091_v40 = vld [vmem:[#allocation8 + $0x810] sm:$0xff]  ;;  %v1110_v24 = vld [vmem:[#allocation8 + $0x8a8] sm:$0xff]  ;;  %v1112_v0 = vld [vmem:[#allocation8 + $0x8b8] sm:$0xff] }
 0x1f5   :  { %1837 = vmatpush1.bf16.msra.mxu0 %v1836_v55  ;;  %1965 = vmatpush1.bf16.msra.mxu1 %v1964_v44  ;;  %v664_v55 = vld [vmem:[#allocation8 + $0x3a8] sm:$0xff]  ;;  %v666_v44 = vld [vmem:[#allocation8 + $0x3b8] sm:$0xff] }
 0x1f6   :  { %1839 = vmatprep.subr.bf16.mxu0 %v1838_v17  ;;  %1967 = vmatprep.subr.bf16.mxu1 %v1966_v23  ;;  %v1856_v17 = vpack.c.bf16 %v661_v59, %v659_v46  ;;  %v1984_v23 = vpack.c.bf16 %v932_v48, %v930_v47  ;;  %v1858_v28 = vpack.c.bf16 %v666_v44, %v664_v55  ;;  %v1096_v46 = vld [vmem:[#allocation8 + $0x838] sm:$0xff]  ;;  %v1365_v59 = vld [vmem:[#allocation8 + $0xc28] sm:$0xff]  ;;  %v1093_v55 = vld [vmem:[#allocation8 + $0x820] sm:$0xff] }
 0x1f7   :  { %v2128_v48 = vpack.c.bf16 %v1362_v3, %v1360_v42  ;;  %v1095_v44 = vld [vmem:[#allocation8 + $0x830] sm:$0xff]  ;;  %v1380_v3 = vld [vmem:[#allocation8 + $0xca0] sm:$0xff] }
 0x1f8   :  { %v1111_v42 = vld [vmem:[#allocation8 + $0x8b0] sm:$0xff] }
 0x1f9   :  { %1841 = vmatpush1.bf16.msra.mxu0 %v1840_v60  ;;  %1969 = vmatpush1.bf16.msra.mxu1 %v1968_v61  ;;  %v668_v60 = vld [vmem:[#allocation8 + $0x3c8] sm:$0xff]  ;;  %v670_v61 = vld [vmem:[#allocation8 + $0x3d8] sm:$0xff] }
 0x1fa   :  { %1843 = vmatprep.subr.bf16.mxu0 %v1842_v49  ;;  %1971 = vmatprep.subr.bf16.mxu1 %v1970_v39  ;;  %v1860_v49 = vpack.c.bf16 %v665_v26, %v663_v57  ;;  %v1988_v39 = vpack.c.bf16 %v936_v58, %v934_v56  ;;  %v1862_v6 = vpack.c.bf16 %v670_v61, %v668_v60  ;;  %v1098_v57 = vld [vmem:[#allocation8 + $0x848] sm:$0xff]  ;;  %v1371_v26 = vld [vmem:[#allocation8 + $0xc58] sm:$0xff]  ;;  %v1097_v56 = vld [vmem:[#allocation8 + $0x840] sm:$0xff] }
 0x1fb   :  { %v1099_v58 = vld [vmem:[#allocation8 + $0x850] sm:$0xff]  ;;  %v1368_v60 = vld [vmem:[#allocation8 + $0xc40] sm:$0xff] }
 0x1fd   :  { %1845 = vmatpush1.bf16.msra.mxu0 %v1844_v16  ;;  %1973 = vmatpush1.bf16.msra.mxu1 %v1972_v25  ;;  %v672_v16 = vld [vmem:[#allocation8 + $0x3e8] sm:$0xff]  ;;  %v674_v25 = vld [vmem:[#allocation8 + $0x3f8] sm:$0xff] }
 0x1fe   :  { %1847 = vmatprep.subr.bf16.mxu0 %v1846_v30  ;;  %1975 = vmatprep.subr.bf16.mxu1 %v1974_v41  ;;  %v1864_v30 = vpack.c.bf16 %v669_v43, %v667_v5  ;;  %v1992_v41 = vpack.c.bf16 %v940_v1, %v938_v14  ;;  %v1866_v35 = vpack.c.bf16 %v674_v25, %v672_v16  ;;  %v1375_v5 = vld [vmem:[#allocation8 + $0xc78] sm:$0xff]  ;;  %v1103_v14 = vld [vmem:[#allocation8 + $0x870] sm:$0xff]  ;;  %v1372_v1 = vld [vmem:[#allocation8 + $0xc60] sm:$0xff] }
 0x1ff   :  { %v2008_v43 = vpack.c.bf16 %v1099_v58, %v1097_v56  ;;  %v1374_v25 = vld [vmem:[#allocation8 + $0xc70] sm:$0xff]  ;;  %v1117_v58 = vld [vmem:[#allocation8 + $0x8e0] sm:$0xff] }
 0x201   :  { %1849 = vmatpush1.bf16.msra.mxu0 %v1848_v9  ;;  %1977 = vmatpush1.bf16.msra.mxu1 %v1976_v54  ;;  %v1090_v9 = vld [vmem:[#allocation8 + $0x808] sm:$0xff]  ;;  %v1092_v54 = vld [vmem:[#allocation8 + $0x818] sm:$0xff] }
 0x202   :  { %1851 = vmatprep.subr.bf16.mxu0 %v1850_v2  ;;  %1979 = vmatprep.subr.bf16.mxu1 %v1978_v38  ;;  %v1868_v2 = vpack.c.bf16 %v673_v12, %v671_v31  ;;  %v1996_v38 = vpack.c.bf16 %v944_v15, %v942_v37  ;;  %v1998_v34 = vpack.c.bf16 %v1092_v54, %v1090_v9  ;;  %v1107_v37 = vld [vmem:[#allocation8 + $0x890] sm:$0xff]  ;;  %v1376_v15 = vld [vmem:[#allocation8 + $0xc80] sm:$0xff] }
 0x203   :  { %v2140_v12 = vpack.c.bf16 %v1374_v25, %v1372_v1  ;;  %v1378_v54 = vld [vmem:[#allocation8 + $0xc90] sm:$0xff] }
 0x204   :  { %v1123_v1 = vld [vmem:[#allocation8 + $0x910] sm:$0xff] }
 0x205   :  { %1853 = vmatpush1.bf16.msra.mxu0 %v1852_v20  ;;  %1981 = vmatpush1.bf16.msra.mxu1 %v1980_v45  ;;  %v1094_v20 = vld [vmem:[#allocation8 + $0x828] sm:$0xff]  ;;  %v399_v45 = vmul.f32 %v2877_v29, %v2825_v19  ;;  %v1100_v19 = vld [vmem:[#allocation8 + $0x858] sm:$0xff] }
 0x206   :  { %1855 = vmatprep.subr.bf16.mxu0 %v1854_v13  ;;  %1983 = vmatprep.subr.bf16.mxu1 %v1982_v36  ;;  %v1367_v13 = vld [vmem:[#allocation8 + $0xc38] sm:$0xff]  ;;  %v2000_v36 = vpack.c.bf16 %v1091_v40, %v1089_v27  ;;  %v2002_v21 = vpack.c.bf16 %v1096_v46, %v1094_v20  ;;  %v1369_v29 = vld [vmem:[#allocation8 + $0xc48] sm:$0xff]  ;;  %v2018_v27 = vpack.c.bf16 %v1112_v0, %v1110_v24  ;;  %v1109_v40 = vld [vmem:[#allocation8 + $0x8a0] sm:$0xff] }
 0x207   :  { %v2902_v47 = vadd.f32 %v2891_v51, %v399_v45  ;;  %v2004_v51 = vpack.c.bf16 %v1095_v44, %v1093_v55  ;;  %v2134_v61 = vpack.c.bf16 %v1371_v26, %v1369_v29  ;;  %v1382_v45 = vld [vmem:[#allocation8 + $0xcb0] sm:$0xff]  ;;  %v1114_v46 = vld [vmem:[#allocation8 + $0x8c8] sm:$0xff]  ;;  %v1120_v29 = vld [vmem:[#allocation8 + $0x8f8] sm:$0xff] }
 0x208   :  { %v2148_v55 = vpack.c.bf16 %v1382_v45, %v1380_v3  ;;  %v1389_v26 = vld [vmem:[#allocation8 + $0xce8] sm:$0xff]  ;;  %v1398_v24 = vld [vmem:[#allocation8 + $0xd30] sm:$0xff] }
 0x209   :  { %1857 = vmatpush1.bf16.msra.mxu0 %v1856_v17  ;;  %1985 = vmatpush1.bf16.msra.mxu1 %v1984_v23  ;;  %v2130_v17 = vpack.c.bf16 %v1367_v13, %v1365_v59  ;;  %v1366_v23 = vld [vmem:[#allocation8 + $0xc30] sm:$0xff]  ;;  %v1116_v59 = vld [vmem:[#allocation8 + $0x8d8] sm:$0xff]  ;;  %v1385_v13 = vld [vmem:[#allocation8 + $0xcc8] sm:$0xff] }
 0x20a   :  { %1859 = vmatprep.subr.bf16.mxu0 %v1858_v28  ;;  %1987 = vmatprep.subr.bf16.mxu1 %v1986_v18  ;;  %v2132_v28 = vpack.c.bf16 %v1366_v23, %v1364_v32  ;;  %v2006_v18 = vpack.c.bf16 %v1100_v19, %v1098_v57  ;;  %v2022_v44 = vpack.c.bf16 %v1116_v59, %v1114_v46  ;;  %v1113_v32 = vld [vmem:[#allocation8 + $0x8c0] sm:$0xff]  ;;  %v1386_v57 = vld [vmem:[#allocation8 + $0xcd0] sm:$0xff]  ;;  %v1118_v19 = vld [vmem:[#allocation8 + $0x8e8] sm:$0xff] }
 0x20b   :  { %v2026_v56 = vpack.c.bf16 %v1120_v29, %v1118_v19  ;;  %v1130_v0 = vld [vmem:[#allocation8 + $0x948] sm:$0xff]  ;;  %v1131_v3 = vld [vmem:[#allocation8 + $0x950] sm:$0xff] }
 0x20c   :  { %v1402_v46 = vld [vmem:[#allocation8 + $0xd50] sm:$0xff]  ;;  %v1134_v59 = vld [vmem:[#allocation8 + $0x968] sm:$0xff] }
 0x20d   :  { %1861 = vmatpush1.bf16.msra.mxu0 %v1860_v49  ;;  %1989 = vmatpush1.bf16.msra.mxu1 %v1988_v39  ;;  %v1104_v49 = vld [vmem:[#allocation8 + $0x878] sm:$0xff]  ;;  %v1373_v39 = vld [vmem:[#allocation8 + $0xc68] sm:$0xff]  ;;  %v1406_v19 = vld [vmem:[#allocation8 + $0xd70] sm:$0xff] }
 0x20e   :  { %1863 = vmatprep.subr.bf16.mxu0 %v1862_v6  ;;  %1991 = vmatprep.subr.bf16.mxu1 %v1990_v7  ;;  %v2136_v6 = vpack.c.bf16 %v1370_v62, %v1368_v60  ;;  %v2010_v7 = vpack.c.bf16 %v1104_v49, %v1102_v4  ;;  %v2138_v16 = vpack.c.bf16 %v1375_v5, %v1373_v39  ;;  %v1119_v60 = vld [vmem:[#allocation8 + $0x8f0] sm:$0xff]  ;;  %v1122_v49 = vld [vmem:[#allocation8 + $0x908] sm:$0xff]  ;;  %v1124_v39 = vld [vmem:[#allocation8 + $0x918] sm:$0xff] }
 0x20f   :  { %v1390_v4 = vld [vmem:[#allocation8 + $0xcf0] sm:$0xff]  ;;  %v1393_v5 = vld [vmem:[#allocation8 + $0xd08] sm:$0xff] }
 0x210   :  { %v1138_v29 = vld [vmem:[#allocation8 + $0x988] sm:$0xff] }
 0x211   :  { %1865 = vmatpush1.bf16.msra.mxu0 %v1864_v30  ;;  %1993 = vmatpush1.bf16.msra.mxu1 %v1992_v41  ;;  %v1377_v30 = vld [vmem:[#allocation8 + $0xc88] sm:$0xff]  ;;  %v1379_v41 = vld [vmem:[#allocation8 + $0xc98] sm:$0xff] }
 0x212   :  { %1867 = vmatprep.subr.bf16.mxu0 %v1866_v35  ;;  %1995 = vmatprep.subr.bf16.mxu1 %v1994_v63  ;;  %v2014_v35 = vpack.c.bf16 %v1108_v50, %v1106_v8  ;;  %v1105_v63 = vld [vmem:[#allocation8 + $0x880] sm:$0xff]  ;;  %v2142_v9 = vpack.c.bf16 %v1379_v41, %v1377_v30  ;;  %v1394_v8 = vld [vmem:[#allocation8 + $0xd10] sm:$0xff]  ;;  %v1126_v50 = vld [vmem:[#allocation8 + $0x928] sm:$0xff] }
 0x213   :  { %v1128_v30 = vld [vmem:[#allocation8 + $0x938] sm:$0xff]  ;;  %v1397_v41 = vld [vmem:[#allocation8 + $0xd28] sm:$0xff] }
 0x215   :  { %1869 = vmatpush1.bf16.msra.mxu0 %v1868_v2  ;;  %1997 = vmatpush1.bf16.msra.mxu1 %v1996_v38  ;;  %v1381_v2 = vld [vmem:[#allocation8 + $0xca8] sm:$0xff]  ;;  %v1383_v38 = vld [vmem:[#allocation8 + $0xcb8] sm:$0xff] }
 0x216   :  { %1999 = vmatprep.subr.bf16.mxu0 %v1998_v34  ;;  %2127 = vmatprep.subr.bf16.mxu1 %v2126_v33  ;;  %v2016_v34 = vpack.c.bf16 %v1107_v37, %v1105_v63  ;;  %v2144_v33 = vpack.c.bf16 %v1378_v54, %v1376_v15  ;;  %v2146_v20 = vpack.c.bf16 %v1383_v38, %v1381_v2  ;;  %v1125_v37 = vld [vmem:[#allocation8 + $0x920] sm:$0xff]  ;;  %v1127_v15 = vld [vmem:[#allocation8 + $0x930] sm:$0xff]  ;;  %v1132_v2 = vld [vmem:[#allocation8 + $0x958] sm:$0xff] }
 0x217   :  { %v2034_v63 = vpack.c.bf16 %v1128_v30, %v1126_v50  ;;  %v1401_v38 = vld [vmem:[#allocation8 + $0xd48] sm:$0xff]  ;;  %v1414_v50 = vld [vmem:[#allocation8 + $0xdb0] sm:$0xff] }
 0x218   :  { %811 = vmatmul.mubr.f32.vlgmr.msra.gmra.mrb[2].mxu0 %v2902_v47  ;;  %1082 = vmatmul.mubr.f32.vlgmr.msra.gmra.mrb[2].mxu1 %v2902_v47  ;;  %v1146_v30 = vld [vmem:[#allocation8 + $0x9c8] sm:$0xff] }
 0x219   :  { %2001 = vmatpush1.bf16.msra.mxu0 %v2000_v36  ;;  %1281 = vmatprep.mubr.f32.mxu0 %v2883_v52  ;;  %v1387_v36 = vld [vmem:[#allocation8 + $0xcd8] sm:$0xff] }
 0x21a   :  { %2129 = vmatpush1.bf16.msra.mxu1 %v2128_v48  ;;  %1552 = vmatprep.mubr.f32.mxu1 %v2883_v52  ;;  %v1101_v52 = vld [vmem:[#allocation8 + $0x860] sm:$0xff]  ;;  %v2020_v48 = vpack.c.bf16 %v1111_v42, %v1109_v40  ;;  %v2150_v23 = vpack.c.bf16 %v1387_v36, %v1385_v13  ;;  %v2038_v40 = vpack.c.bf16 %v1132_v2, %v1130_v0  ;;  %v1136_v13 = vld [vmem:[#allocation8 + $0x978] sm:$0xff]  ;;  %v1405_v36 = vld [vmem:[#allocation8 + $0xd68] sm:$0xff] }
 0x21b   :  { %2003 = vmatprep.subr.bf16.mxu0 %v2002_v21  ;;  %2131 = vmatprep.subr.bf16.mxu1 %v2130_v17  ;;  %v2012_v31 = vpack.c.bf16 %v1103_v14, %v1101_v52  ;;  %v1115_v21 = vld [vmem:[#allocation8 + $0x8d0] sm:$0xff]  ;;  %v1384_v17 = vld [vmem:[#allocation8 + $0xcc0] sm:$0xff]  ;;  %v2030_v52 = vpack.c.bf16 %v1124_v39, %v1122_v49  ;;  %v1142_v39 = vld [vmem:[#allocation8 + $0x9a8] sm:$0xff] }
 0x21c   :  { %v1121_v14 = vld [vmem:[#allocation8 + $0x900] sm:$0xff]  ;;  %v1410_v49 = vld [vmem:[#allocation8 + $0xd90] sm:$0xff]  ;;  %v1150_v2 = vld [vmem:[#allocation8 + $0x9e8] sm:$0xff] }
 0x21d   :  { %2005 = vmatpush1.bf16.msra.mxu0 %v2004_v51  ;;  %v1391_v51 = vld [vmem:[#allocation8 + $0xcf8] sm:$0xff]  ;;  %v1129_v42 = vld [vmem:[#allocation8 + $0x940] sm:$0xff]  ;;  %v1418_v0 = vld [vmem:[#allocation8 + $0xdd0] sm:$0xff] }
 0x21e   :  { %2133 = vmatpush1.bf16.msra.mxu1 %v2132_v28  ;;  %2007 = vmatprep.subr.bf16.mxu0 %v2006_v18  ;;  %v2024_v28 = vpack.c.bf16 %v1115_v21, %v1113_v32  ;;  %v2152_v18 = vpack.c.bf16 %v1386_v57, %v1384_v17  ;;  %v2154_v62 = vpack.c.bf16 %v1391_v51, %v1389_v26  ;;  %v1133_v21 = vld [vmem:[#allocation8 + $0x960] sm:$0xff]  ;;  %v1135_v17 = vld [vmem:[#allocation8 + $0x970] sm:$0xff]  ;;  %v1140_v26 = vld [vmem:[#allocation8 + $0x998] sm:$0xff] }
 0x21f   :  { %2135 = vmatprep.subr.bf16.mxu1 %v2134_v61  ;;  %v1388_v61 = vld [vmem:[#allocation8 + $0xce0] sm:$0xff]  ;;  %v2042_v32 = vpack.c.bf16 %v1136_v13, %v1134_v59  ;;  %v1409_v51 = vld [vmem:[#allocation8 + $0xd88] sm:$0xff]  ;;  %v1422_v59 = vld [vmem:[#allocation8 + $0xdf0] sm:$0xff] }
 0x220   :  { %v1154_v13 = vld [vmem:[#allocation8 + $0xa08] sm:$0xff] }
 0x221   :  { %2009 = vmatpush1.bf16.msra.mxu0 %v2008_v43  ;;  %v1395_v43 = vld [vmem:[#allocation8 + $0xd18] sm:$0xff] }
 0x222   :  { %2137 = vmatpush1.bf16.msra.mxu1 %v2136_v6  ;;  %2011 = vmatprep.subr.bf16.mxu0 %v2010_v7  ;;  %v2028_v6 = vpack.c.bf16 %v1119_v60, %v1117_v58  ;;  %v2156_v7 = vpack.c.bf16 %v1390_v4, %v1388_v61  ;;  %v2158_v25 = vpack.c.bf16 %v1395_v43, %v1393_v5  ;;  %v1137_v60 = vld [vmem:[#allocation8 + $0x980] sm:$0xff]  ;;  %v1139_v61 = vld [vmem:[#allocation8 + $0x990] sm:$0xff]  ;;  %v1144_v5 = vld [vmem:[#allocation8 + $0x9b8] sm:$0xff] }
 0x223   :  { %2139 = vmatprep.subr.bf16.mxu1 %v2138_v16  ;;  %v1392_v16 = vld [vmem:[#allocation8 + $0xd00] sm:$0xff]  ;;  %v2046_v58 = vpack.c.bf16 %v1140_v26, %v1138_v29  ;;  %v1413_v43 = vld [vmem:[#allocation8 + $0xda8] sm:$0xff]  ;;  %v1426_v29 = vld [vmem:[#allocation8 + $0xe10] sm:$0xff] }
 0x224   :  { %v1158_v26 = vld [vmem:[#allocation8 + $0xa28] sm:$0xff] }
 0x225   :  { %2013 = vmatpush1.bf16.msra.mxu0 %v2012_v31  ;;  %v1399_v31 = vld [vmem:[#allocation8 + $0xd38] sm:$0xff] }
 0x226   :  { %2141 = vmatpush1.bf16.msra.mxu1 %v2140_v12  ;;  %2015 = vmatprep.subr.bf16.mxu0 %v2014_v35  ;;  %v2032_v12 = vpack.c.bf16 %v1123_v1, %v1121_v14  ;;  %v2160_v35 = vpack.c.bf16 %v1394_v8, %v1392_v16  ;;  %v2162_v54 = vpack.c.bf16 %v1399_v31, %v1397_v41  ;;  %v1141_v1 = vld [vmem:[#allocation8 + $0x9a0] sm:$0xff]  ;;  %v1143_v16 = vld [vmem:[#allocation8 + $0x9b0] sm:$0xff]  ;;  %v1148_v41 = vld [vmem:[#allocation8 + $0x9d8] sm:$0xff] }
 0x227   :  { %2143 = vmatprep.subr.bf16.mxu1 %v2142_v9  ;;  %v1396_v9 = vld [vmem:[#allocation8 + $0xd20] sm:$0xff]  ;;  %v2050_v14 = vpack.c.bf16 %v1144_v5, %v1142_v39  ;;  %v1417_v31 = vld [vmem:[#allocation8 + $0xdc8] sm:$0xff]  ;;  %v1164_v5 = vld [vmem:[#allocation8 + $0xa58] sm:$0xff] }
 0x228   :  { %v1162_v39 = vld [vmem:[#allocation8 + $0xa48] sm:$0xff] }
 0x229   :  { %2017 = vmatpush1.bf16.msra.mxu0 %v2016_v34  ;;  %v1403_v34 = vld [vmem:[#allocation8 + $0xd58] sm:$0xff] }
 0x22a   :  { %2145 = vmatpush1.bf16.msra.mxu1 %v2144_v33  ;;  %2019 = vmatprep.subr.bf16.mxu0 %v2018_v27  ;;  %v2036_v33 = vpack.c.bf16 %v1127_v15, %v1125_v37  ;;  %v2164_v27 = vpack.c.bf16 %v1398_v24, %v1396_v9  ;;  %v2166_v45 = vpack.c.bf16 %v1403_v34, %v1401_v38  ;;  %v1145_v15 = vld [vmem:[#allocation8 + $0x9c0] sm:$0xff]  ;;  %v1147_v9 = vld [vmem:[#allocation8 + $0x9d0] sm:$0xff]  ;;  %v1152_v38 = vld [vmem:[#allocation8 + $0x9f8] sm:$0xff] }
 0x22b   :  { %2147 = vmatprep.subr.bf16.mxu1 %v2146_v20  ;;  %v1400_v20 = vld [vmem:[#allocation8 + $0xd40] sm:$0xff]  ;;  %v2054_v37 = vpack.c.bf16 %v1148_v41, %v1146_v30  ;;  %v1421_v34 = vld [vmem:[#allocation8 + $0xde8] sm:$0xff]  ;;  %v1434_v30 = vld [vmem:[#allocation8 + $0xe50] sm:$0xff] }
 0x22c   :  { %v1166_v41 = vld [vmem:[#allocation8 + $0xa68] sm:$0xff] }
 0x22d   :  { %2021 = vmatpush1.bf16.msra.mxu0 %v2020_v48  ;;  %v1407_v48 = vld [vmem:[#allocation8 + $0xd78] sm:$0xff] }
 0x22e   :  { %2149 = vmatpush1.bf16.msra.mxu1 %v2148_v55  ;;  %2023 = vmatprep.subr.bf16.mxu0 %v2022_v44  ;;  %v2040_v55 = vpack.c.bf16 %v1131_v3, %v1129_v42  ;;  %v2168_v44 = vpack.c.bf16 %v1402_v46, %v1400_v20  ;;  %v2170_v57 = vpack.c.bf16 %v1407_v48, %v1405_v36  ;;  %v1149_v3 = vld [vmem:[#allocation8 + $0x9e0] sm:$0xff]  ;;  %v1151_v20 = vld [vmem:[#allocation8 + $0x9f0] sm:$0xff]  ;;  %v1156_v36 = vld [vmem:[#allocation8 + $0xa18] sm:$0xff] }
 0x22f   :  { %2151 = vmatprep.subr.bf16.mxu1 %v2150_v23  ;;  %v1404_v23 = vld [vmem:[#allocation8 + $0xd60] sm:$0xff]  ;;  %v2058_v42 = vpack.c.bf16 %v1152_v38, %v1150_v2  ;;  %v1425_v48 = vld [vmem:[#allocation8 + $0xe08] sm:$0xff]  ;;  %v1172_v2 = vld [vmem:[#allocation8 + $0xa98] sm:$0xff] }
 0x230   :  { %v1441_v38 = vld [vmem:[#allocation8 + $0xe88] sm:$0xff] }
 0x231   :  { %2025 = vmatpush1.bf16.msra.mxu0 %v2024_v28  ;;  %v1411_v28 = vld [vmem:[#allocation8 + $0xd98] sm:$0xff] }
 0x232   :  { %2153 = vmatpush1.bf16.msra.mxu1 %v2152_v18  ;;  %2027 = vmatprep.subr.bf16.mxu0 %v2026_v56  ;;  %v2044_v18 = vpack.c.bf16 %v1135_v17, %v1133_v21  ;;  %v2172_v56 = vpack.c.bf16 %v1406_v19, %v1404_v23  ;;  %v2174_v4 = vpack.c.bf16 %v1411_v28, %v1409_v51  ;;  %v1153_v17 = vld [vmem:[#allocation8 + $0xa00] sm:$0xff]  ;;  %v1155_v23 = vld [vmem:[#allocation8 + $0xa10] sm:$0xff]  ;;  %v1160_v51 = vld [vmem:[#allocation8 + $0xa38] sm:$0xff] }
 0x233   :  { %2155 = vmatprep.subr.bf16.mxu1 %v2154_v62  ;;  %v1408_v62 = vld [vmem:[#allocation8 + $0xd80] sm:$0xff]  ;;  %v2062_v21 = vpack.c.bf16 %v1156_v36, %v1154_v13  ;;  %v2064_v28 = vpack.c.bf16 %v1155_v23, %v1153_v17  ;;  %v1176_v13 = vld [vmem:[#allocation8 + $0xab8] sm:$0xff]  ;;  %v1445_v36 = vld [vmem:[#allocation8 + $0xea8] sm:$0xff] }
 0x234   :  { %v1424_v19 = vld [vmem:[#allocation8 + $0xe00] sm:$0xff]  ;;  %v1175_v17 = vld [vmem:[#allocation8 + $0xab0] sm:$0xff] }
 0x235   :  { %2029 = vmatpush1.bf16.msra.mxu0 %v2028_v6  ;;  %v1415_v6 = vld [vmem:[#allocation8 + $0xdb8] sm:$0xff]  ;;  %v1444_v23 = vld [vmem:[#allocation8 + $0xea0] sm:$0xff] }
 0x236   :  { %2157 = vmatpush1.bf16.msra.mxu1 %v2156_v7  ;;  %2031 = vmatprep.subr.bf16.mxu0 %v2030_v52  ;;  %v2048_v7 = vpack.c.bf16 %v1139_v61, %v1137_v60  ;;  %v2176_v52 = vpack.c.bf16 %v1410_v49, %v1408_v62  ;;  %v2178_v8 = vpack.c.bf16 %v1415_v6, %v1413_v43  ;;  %v1157_v60 = vld [vmem:[#allocation8 + $0xa20] sm:$0xff]  ;;  %v1159_v61 = vld [vmem:[#allocation8 + $0xa30] sm:$0xff]  ;;  %v1433_v6 = vld [vmem:[#allocation8 + $0xe48] sm:$0xff] }
 0x237   :  { %2159 = vmatprep.subr.bf16.mxu1 %v2158_v25  ;;  %v1412_v25 = vld [vmem:[#allocation8 + $0xda0] sm:$0xff]  ;;  %v1430_v49 = vld [vmem:[#allocation8 + $0xe30] sm:$0xff] }
 0x238   :  { %v1428_v62 = vld [vmem:[#allocation8 + $0xe20] sm:$0xff] }
 0x239   :  { %2033 = vmatpush1.bf16.msra.mxu0 %v2032_v12  ;;  %v1419_v12 = vld [vmem:[#allocation8 + $0xdd8] sm:$0xff] }
 0x23a   :  { %2161 = vmatpush1.bf16.msra.mxu1 %v2160_v35  ;;  %2035 = vmatprep.subr.bf16.mxu0 %v2034_v63  ;;  %v2052_v35 = vpack.c.bf16 %v1143_v16, %v1141_v1  ;;  %v2180_v63 = vpack.c.bf16 %v1414_v50, %v1412_v25  ;;  %v2182_v24 = vpack.c.bf16 %v1419_v12, %v1417_v31  ;;  %v1161_v16 = vld [vmem:[#allocation8 + $0xa40] sm:$0xff]  ;;  %v1163_v25 = vld [vmem:[#allocation8 + $0xa50] sm:$0xff]  ;;  %v1168_v31 = vld [vmem:[#allocation8 + $0xa78] sm:$0xff] }
 0x23b   :  { %2163 = vmatprep.subr.bf16.mxu1 %v2162_v54  ;;  %v1416_v54 = vld [vmem:[#allocation8 + $0xdc0] sm:$0xff]  ;;  %v2070_v1 = vpack.c.bf16 %v1164_v5, %v1162_v39  ;;  %v1437_v12 = vld [vmem:[#allocation8 + $0xe68] sm:$0xff]  ;;  %v1184_v5 = vld [vmem:[#allocation8 + $0xaf8] sm:$0xff] }
 0x23c   :  { %v1182_v39 = vld [vmem:[#allocation8 + $0xae8] sm:$0xff] }
 0x23d   :  { %2037 = vmatpush1.bf16.msra.mxu0 %v2036_v33  ;;  %v1423_v33 = vld [vmem:[#allocation8 + $0xdf8] sm:$0xff] }
 0x23e   :  { %2165 = vmatpush1.bf16.msra.mxu1 %v2164_v27  ;;  %2039 = vmatprep.subr.bf16.mxu0 %v2038_v40  ;;  %v2056_v27 = vpack.c.bf16 %v1147_v9, %v1145_v15  ;;  %v2184_v40 = vpack.c.bf16 %v1418_v0, %v1416_v54  ;;  %v2186_v46 = vpack.c.bf16 %v1423_v33, %v1421_v34  ;;  %v1165_v15 = vld [vmem:[#allocation8 + $0xa60] sm:$0xff]  ;;  %v1167_v9 = vld [vmem:[#allocation8 + $0xa70] sm:$0xff]  ;;  %v1170_v0 = vld [vmem:[#allocation8 + $0xa88] sm:$0xff] }
 0x23f   :  { %2167 = vmatprep.subr.bf16.mxu1 %v2166_v45  ;;  %v1420_v45 = vld [vmem:[#allocation8 + $0xde0] sm:$0xff]  ;;  %v1443_v34 = vld [vmem:[#allocation8 + $0xe98] sm:$0xff]  ;;  %v2076_v33 = vpack.c.bf16 %v1167_v9, %v1165_v15  ;;  %v1187_v15 = vld [vmem:[#allocation8 + $0xb10] sm:$0xff] }
 0x240   :  { %v1436_v54 = vld [vmem:[#allocation8 + $0xe60] sm:$0xff] }
 0x241   :  { %2041 = vmatpush1.bf16.msra.mxu0 %v2040_v55  ;;  %v1427_v55 = vld [vmem:[#allocation8 + $0xe18] sm:$0xff]  ;;  %v1456_v9 = vld [vmem:[#allocation8 + $0xf00] sm:$0xff] }
 0x242   :  { %2169 = vmatpush1.bf16.msra.mxu1 %v2168_v44  ;;  %2043 = vmatprep.subr.bf16.mxu0 %v2042_v32  ;;  %v2060_v44 = vpack.c.bf16 %v1151_v20, %v1149_v3  ;;  %v2188_v32 = vpack.c.bf16 %v1422_v59, %v1420_v45  ;;  %v1171_v3 = vld [vmem:[#allocation8 + $0xa90] sm:$0xff]  ;;  %v1440_v20 = vld [vmem:[#allocation8 + $0xe80] sm:$0xff]  ;;  %v2206_v45 = vpack.c.bf16 %v1443_v34, %v1441_v38  ;;  %v1174_v59 = vld [vmem:[#allocation8 + $0xaa8] sm:$0xff] }
 0x243   :  { %2171 = vmatprep.subr.bf16.mxu1 %v2170_v57  ;;  %v2190_v57 = vpack.c.bf16 %v1427_v55, %v1425_v48  ;;  %v1447_v48 = vld [vmem:[#allocation8 + $0xeb8] sm:$0xff] }
 0x244   :  { %v1463_v38 = vld [vmem:[#allocation8 + $0xf38] sm:$0xff] }
 0x245   :  { %2045 = vmatpush1.bf16.msra.mxu0 %v2044_v18  ;;  %v1429_v18 = vld [vmem:[#allocation8 + $0xe28] sm:$0xff] }
 0x246   :  { %2173 = vmatpush1.bf16.msra.mxu1 %v2172_v56  ;;  %2047 = vmatprep.subr.bf16.mxu0 %v2046_v58  ;;  %v1431_v56 = vld [vmem:[#allocation8 + $0xe38] sm:$0xff]  ;;  %v2192_v58 = vpack.c.bf16 %v1426_v29, %v1424_v19  ;;  %v1446_v19 = vld [vmem:[#allocation8 + $0xeb0] sm:$0xff]  ;;  %v1178_v29 = vld [vmem:[#allocation8 + $0xac8] sm:$0xff] }
 0x247   :  { %2175 = vmatprep.subr.bf16.mxu1 %v2174_v4  ;;  %v2066_v4 = vpack.c.bf16 %v1160_v51, %v1158_v26  ;;  %v2194_v43 = vpack.c.bf16 %v1431_v56, %v1429_v18  ;;  %v1180_v26 = vld [vmem:[#allocation8 + $0xad8] sm:$0xff]  ;;  %v1449_v51 = vld [vmem:[#allocation8 + $0xec8] sm:$0xff]  ;;  %v2212_v56 = vpack.c.bf16 %v1446_v19, %v1444_v23 }
 0x248   :  { %v1198_v19 = vld [vmem:[#allocation8 + $0xb68] sm:$0xff] }
 0x249   :  { %2049 = vmatpush1.bf16.msra.mxu0 %v2048_v7  ;;  %v1435_v7 = vld [vmem:[#allocation8 + $0xe58] sm:$0xff] }
 0x24a   :  { %2177 = vmatpush1.bf16.msra.mxu1 %v2176_v52  ;;  %2051 = vmatprep.subr.bf16.mxu0 %v2050_v14  ;;  %v2068_v52 = vpack.c.bf16 %v1159_v61, %v1157_v60  ;;  %v2196_v14 = vpack.c.bf16 %v1430_v49, %v1428_v62  ;;  %v2198_v50 = vpack.c.bf16 %v1435_v7, %v1433_v6  ;;  %v1177_v60 = vld [vmem:[#allocation8 + $0xac0] sm:$0xff]  ;;  %v1179_v61 = vld [vmem:[#allocation8 + $0xad0] sm:$0xff]  ;;  %v1455_v6 = vld [vmem:[#allocation8 + $0xef8] sm:$0xff] }
 0x24b   :  { %2179 = vmatprep.subr.bf16.mxu1 %v2178_v8  ;;  %v1432_v8 = vld [vmem:[#allocation8 + $0xe40] sm:$0xff]  ;;  %v1450_v49 = vld [vmem:[#allocation8 + $0xed0] sm:$0xff]  ;;  %v2088_v7 = vpack.c.bf16 %v1179_v61, %v1177_v60 }
 0x24c   :  { %v1448_v62 = vld [vmem:[#allocation8 + $0xec0] sm:$0xff]  ;;  %v1199_v60 = vld [vmem:[#allocation8 + $0xb70] sm:$0xff] }
 0x24d   :  { %2053 = vmatpush1.bf16.msra.mxu0 %v2052_v35  ;;  %v2072_v35 = vpack.c.bf16 %v1163_v25, %v1161_v16  ;;  %v1183_v16 = vld [vmem:[#allocation8 + $0xaf0] sm:$0xff]  ;;  %v1452_v25 = vld [vmem:[#allocation8 + $0xee0] sm:$0xff] }
 0x24e   :  { %2181 = vmatpush1.bf16.msra.mxu1 %v2180_v63  ;;  %2055 = vmatprep.subr.bf16.mxu0 %v2054_v37  ;;  %v2200_v63 = vpack.c.bf16 %v1434_v30, %v1432_v8  ;;  %v2074_v37 = vpack.c.bf16 %v1168_v31, %v1166_v41  ;;  %v1186_v30 = vld [vmem:[#allocation8 + $0xb08] sm:$0xff]  ;;  %v1188_v41 = vld [vmem:[#allocation8 + $0xb18] sm:$0xff]  ;;  %v1468_v61 = vld [vmem:[#allocation8 + $0xf60] sm:$0xff] }
 0x24f   :  { %2183 = vmatprep.subr.bf16.mxu1 %v2182_v24  ;;  %v1457_v31 = vld [vmem:[#allocation8 + $0xf08] sm:$0xff] }
 0x251   :  { %2057 = vmatpush1.bf16.msra.mxu0 %v2056_v27 }
 0x252   :  { %2185 = vmatpush1.bf16.msra.mxu1 %v2184_v40  ;;  %2059 = vmatprep.subr.bf16.mxu0 %v2058_v42  ;;  %v2078_v40 = vpack.c.bf16 %v1172_v2, %v1170_v0  ;;  %v1169_v42 = vld [vmem:[#allocation8 + $0xa80] sm:$0xff]  ;;  %v1192_v0 = vld [vmem:[#allocation8 + $0xb38] sm:$0xff]  ;;  %v1461_v2 = vld [vmem:[#allocation8 + $0xf28] sm:$0xff] }
 0x253   :  { %2187 = vmatprep.subr.bf16.mxu1 %v2186_v46  ;;  %v1442_v46 = vld [vmem:[#allocation8 + $0xe90] sm:$0xff]  ;;  %v2080_v55 = vpack.c.bf16 %v1171_v3, %v1169_v42  ;;  %v1460_v3 = vld [vmem:[#allocation8 + $0xf20] sm:$0xff] }
 0x254   :  { %v1191_v42 = vld [vmem:[#allocation8 + $0xb30] sm:$0xff] }
 0x255   :  { %2061 = vmatpush1.bf16.msra.mxu0 %v2060_v44  ;;  %v2208_v44 = vpack.c.bf16 %v1442_v46, %v1440_v20  ;;  %v2226_v20 = vpack.c.bf16 %v1463_v38, %v1461_v2  ;;  %v1194_v46 = vld [vmem:[#allocation8 + $0xb48] sm:$0xff]  ;;  %v1483_v2 = vld [vmem:[#allocation8 + $0xfd8] sm:$0xff] }
 0x256   :  { %2189 = vmatpush1.bf16.msra.mxu1 %v2188_v32  ;;  %2063 = vmatprep.subr.bf16.mxu0 %v2062_v21  ;;  %v2082_v32 = vpack.c.bf16 %v1176_v13, %v1174_v59  ;;  %v1173_v21 = vld [vmem:[#allocation8 + $0xaa0] sm:$0xff]  ;;  %v1196_v59 = vld [vmem:[#allocation8 + $0xb58] sm:$0xff]  ;;  %v1465_v13 = vld [vmem:[#allocation8 + $0xf48] sm:$0xff] }
 0x257   :  { %2191 = vmatprep.subr.bf16.mxu1 %v2190_v57  ;;  %v2210_v57 = vpack.c.bf16 %v1447_v48, %v1445_v36  ;;  %v2084_v18 = vpack.c.bf16 %v1175_v17, %v1173_v21  ;;  %v1467_v36 = vld [vmem:[#allocation8 + $0xf58] sm:$0xff]  ;;  %v1195_v21 = vld [vmem:[#allocation8 + $0xb50] sm:$0xff]  ;;  %v1464_v17 = vld [vmem:[#allocation8 + $0xf40] sm:$0xff] }
 0x258   :  { %1282 = vmatmul.mubr.f32.vlgmr.msra.gmra.mrb[4].mxu0 %v2885_v53  ;;  %v2230_v23 = vpack.c.bf16 %v1467_v36, %v1465_v13  ;;  %v1487_v13 = vld [vmem:[#allocation8 + $0xff8] sm:$0xff] }
 0x259   :  { %1553 = vmatmul.mubr.f32.vlgmr.msra.gmra.mrb[4].mxu1 %v2885_v53  ;;  %2065 = vmatpush1.bf16.msra.mxu0 %v2064_v28  ;;  %v1439_v53 = vld [vmem:[#allocation8 + $0xe78] sm:$0xff] }
 0x25a   :  { %1352 = vmatprep.mubr.f32.mxu0 %v2895_v22  ;;  %2193 = vmatpush1.bf16.msra.mxu1 %v2192_v58  ;;  %v2202_v24 = vpack.c.bf16 %v1439_v53, %v1437_v12  ;;  %v1451_v28 = vld [vmem:[#allocation8 + $0xed8] sm:$0xff]  ;;  %v2086_v58 = vpack.c.bf16 %v1180_v26, %v1178_v29  ;;  %v1469_v26 = vld [vmem:[#allocation8 + $0xf68] sm:$0xff] }
 0x25b   :  { %1623 = vmatprep.mubr.f32.mxu1 %v2895_v22  ;;  %2067 = vmatprep.subr.bf16.mxu0 %v2066_v4  ;;  %v1438_v22 = vld [vmem:[#allocation8 + $0xe70] sm:$0xff]  ;;  %v2214_v4 = vpack.c.bf16 %v1451_v28, %v1449_v51  ;;  %v1459_v12 = vld [vmem:[#allocation8 + $0xf18] sm:$0xff] }
 0x25c   :  { %2195 = vmatprep.subr.bf16.mxu1 %v2194_v43  ;;  %v2204_v27 = vpack.c.bf16 %v1438_v22, %v1436_v54  ;;  %v1453_v43 = vld [vmem:[#allocation8 + $0xee8] sm:$0xff]  ;;  %v2222_v54 = vpack.c.bf16 %v1459_v12, %v1457_v31  ;;  %v1200_v29 = vld [vmem:[#allocation8 + $0xb78] sm:$0xff] }
 0x25d   :  { %2069 = vmatpush1.bf16.msra.mxu0 %v2068_v52  ;;  %v2216_v52 = vpack.c.bf16 %v1450_v49, %v1448_v62  ;;  %v2218_v8 = vpack.c.bf16 %v1455_v6, %v1453_v43  ;;  %v1190_v22 = vld [vmem:[#allocation8 + $0xb28] sm:$0xff]  ;;  %v1471_v51 = vld [vmem:[#allocation8 + $0xf78] sm:$0xff] }
 0x25e   :  { %2197 = vmatpush1.bf16.msra.mxu1 %v2196_v14  ;;  %2071 = vmatprep.subr.bf16.mxu0 %v2070_v1  ;;  %v2090_v14 = vpack.c.bf16 %v1184_v5, %v1182_v39  ;;  %v1181_v1 = vld [vmem:[#allocation8 + $0xae0] sm:$0xff]  ;;  %v2234_v62 = vpack.c.bf16 %v1471_v51, %v1469_v26  ;;  %v1202_v49 = vld [vmem:[#allocation8 + $0xb88] sm:$0xff]  ;;  %v1204_v39 = vld [vmem:[#allocation8 + $0xb98] sm:$0xff] }
 0x25f   :  { %2199 = vmatprep.subr.bf16.mxu1 %v2198_v50  ;;  %v1454_v50 = vld [vmem:[#allocation8 + $0xef0] sm:$0xff]  ;;  %v2092_v53 = vpack.c.bf16 %v1183_v16, %v1181_v1  ;;  %v1473_v5 = vld [vmem:[#allocation8 + $0xf88] sm:$0xff]  ;;  %v1475_v43 = vld [vmem:[#allocation8 + $0xf98] sm:$0xff] }
 0x260   :  { %v1203_v1 = vld [vmem:[#allocation8 + $0xb90] sm:$0xff]  ;;  %v1472_v16 = vld [vmem:[#allocation8 + $0xf80] sm:$0xff]  ;;  %v1479_v31 = vld [vmem:[#allocation8 + $0xfb8] sm:$0xff] }
 0x261   :  { %2073 = vmatpush1.bf16.msra.mxu0 %v2072_v35  ;;  %v2220_v35 = vpack.c.bf16 %v1454_v50, %v1452_v25  ;;  %v2238_v25 = vpack.c.bf16 %v1475_v43, %v1473_v5  ;;  %v1206_v50 = vld [vmem:[#allocation8 + $0xba8] sm:$0xff] }
 0x262   :  { %2201 = vmatpush1.bf16.msra.mxu1 %v2200_v63  ;;  %2075 = vmatprep.subr.bf16.mxu0 %v2074_v37  ;;  %v2094_v63 = vpack.c.bf16 %v1188_v41, %v1186_v30  ;;  %v1185_v37 = vld [vmem:[#allocation8 + $0xb00] sm:$0xff]  ;;  %v1208_v30 = vld [vmem:[#allocation8 + $0xbb8] sm:$0xff]  ;;  %v1477_v41 = vld [vmem:[#allocation8 + $0xfa8] sm:$0xff] }
 0x263   :  { %2203 = vmatprep.subr.bf16.mxu1 %v2202_v24  ;;  %v1458_v24 = vld [vmem:[#allocation8 + $0xf10] sm:$0xff]  ;;  %v2096_v34 = vpack.c.bf16 %v1187_v15, %v1185_v37  ;;  %v1476_v15 = vld [vmem:[#allocation8 + $0xfa0] sm:$0xff] }
 0x264   :  { %v1207_v37 = vld [vmem:[#allocation8 + $0xbb0] sm:$0xff] }
 0x265   :  { %2077 = vmatpush1.bf16.msra.mxu0 %v2076_v33  ;;  %v2224_v33 = vpack.c.bf16 %v1458_v24, %v1456_v9  ;;  %v2242_v9 = vpack.c.bf16 %v1479_v31, %v1477_v41  ;;  %v1210_v24 = vld [vmem:[#allocation8 + $0xbc8] sm:$0xff] }
 0x266   :  { %2205 = vmatpush1.bf16.msra.mxu1 %v2204_v27  ;;  %2079 = vmatprep.subr.bf16.mxu0 %v2078_v40  ;;  %v2098_v27 = vpack.c.bf16 %v1192_v0, %v1190_v22  ;;  %v1189_v40 = vld [vmem:[#allocation8 + $0xb20] sm:$0xff]  ;;  %v1212_v22 = vld [vmem:[#allocation8 + $0xbd8] sm:$0xff]  ;;  %v1481_v0 = vld [vmem:[#allocation8 + $0xfc8] sm:$0xff] }
 0x267   :  { %2207 = vmatprep.subr.bf16.mxu1 %v2206_v45  ;;  %v1462_v45 = vld [vmem:[#allocation8 + $0xf30] sm:$0xff]  ;;  %v2100_v48 = vpack.c.bf16 %v1191_v42, %v1189_v40  ;;  %v1480_v42 = vld [vmem:[#allocation8 + $0xfc0] sm:$0xff] }
 0x268   :  { %v1211_v40 = vld [vmem:[#allocation8 + $0xbd0] sm:$0xff] }
 0x269   :  { %2081 = vmatpush1.bf16.msra.mxu0 %v2080_v55  ;;  %v2228_v55 = vpack.c.bf16 %v1462_v45, %v1460_v3  ;;  %v2246_v3 = vpack.c.bf16 %v1483_v2, %v1481_v0  ;;  %v1214_v45 = vld [vmem:[#allocation8 + $0xbe8] sm:$0xff] }
 0x26a   :  { %2209 = vmatpush1.bf16.msra.mxu1 %v2208_v44  ;;  %2083 = vmatprep.subr.bf16.mxu0 %v2082_v32  ;;  %v2102_v44 = vpack.c.bf16 %v1196_v59, %v1194_v46  ;;  %v1193_v32 = vld [vmem:[#allocation8 + $0xb40] sm:$0xff]  ;;  %v1216_v46 = vld [vmem:[#allocation8 + $0xbf8] sm:$0xff]  ;;  %v1485_v59 = vld [vmem:[#allocation8 + $0xfe8] sm:$0xff] }
 0x26b   :  { %2211 = vmatprep.subr.bf16.mxu1 %v2210_v57  ;;  %v1466_v57 = vld [vmem:[#allocation8 + $0xf50] sm:$0xff]  ;;  %v2104_v28 = vpack.c.bf16 %v1195_v21, %v1193_v32  ;;  %v2250_v21 = vpack.c.bf16 %v1487_v13, %v1485_v59 }
 0x26c   :  { %v1215_v32 = vld [vmem:[#allocation8 + $0xbf0] sm:$0xff] }
 0x26d   :  { %2085 = vmatpush1.bf16.msra.mxu0 %v2084_v18  ;;  %v2232_v18 = vpack.c.bf16 %v1466_v57, %v1464_v17  ;;  %v1484_v17 = vld [vmem:[#allocation8 + $0xfe0] sm:$0xff] }
 0x26e   :  { %2213 = vmatpush1.bf16.msra.mxu1 %v2212_v56  ;;  %2087 = vmatprep.subr.bf16.mxu0 %v2086_v58  ;;  %v2106_v56 = vpack.c.bf16 %v1200_v29, %v1198_v19  ;;  %v1197_v58 = vld [vmem:[#allocation8 + $0xb60] sm:$0xff] }
 0x26f   :  { %2215 = vmatprep.subr.bf16.mxu1 %v2214_v4  ;;  %v1470_v4 = vld [vmem:[#allocation8 + $0xf70] sm:$0xff]  ;;  %v2108_v6 = vpack.c.bf16 %v1199_v60, %v1197_v58 }
 0x271   :  { %2089 = vmatpush1.bf16.msra.mxu0 %v2088_v7  ;;  %v2236_v7 = vpack.c.bf16 %v1470_v4, %v1468_v61 }
 0x272   :  { %2217 = vmatpush1.bf16.msra.mxu1 %v2216_v52  ;;  %2091 = vmatprep.subr.bf16.mxu0 %v2090_v14  ;;  %v2110_v52 = vpack.c.bf16 %v1204_v39, %v1202_v49  ;;  %v1201_v14 = vld [vmem:[#allocation8 + $0xb80] sm:$0xff] }
 0x273   :  { %2219 = vmatprep.subr.bf16.mxu1 %v2218_v8  ;;  %v1474_v8 = vld [vmem:[#allocation8 + $0xf90] sm:$0xff]  ;;  %v2112_v12 = vpack.c.bf16 %v1203_v1, %v1201_v14 }
 0x275   :  { %2093 = vmatpush1.bf16.msra.mxu0 %v2092_v53  ;;  %v2240_v53 = vpack.c.bf16 %v1474_v8, %v1472_v16 }
 0x276   :  { %2221 = vmatpush1.bf16.msra.mxu1 %v2220_v35  ;;  %2095 = vmatprep.subr.bf16.mxu0 %v2094_v63  ;;  %v2114_v35 = vpack.c.bf16 %v1208_v30, %v1206_v50  ;;  %v1205_v63 = vld [vmem:[#allocation8 + $0xba0] sm:$0xff] }
 0x277   :  { %2223 = vmatprep.subr.bf16.mxu1 %v2222_v54  ;;  %v1478_v54 = vld [vmem:[#allocation8 + $0xfb0] sm:$0xff]  ;;  %v2116_v38 = vpack.c.bf16 %v1207_v37, %v1205_v63 }
 0x279   :  { %2097 = vmatpush1.bf16.msra.mxu0 %v2096_v34  ;;  %v2244_v34 = vpack.c.bf16 %v1478_v54, %v1476_v15 }
 0x27a   :  { %2225 = vmatpush1.bf16.msra.mxu1 %v2224_v33  ;;  %2099 = vmatprep.subr.bf16.mxu0 %v2098_v27  ;;  %v2118_v33 = vpack.c.bf16 %v1212_v22, %v1210_v24  ;;  %v1209_v27 = vld [vmem:[#allocation8 + $0xbc0] sm:$0xff] }
 0x27b   :  { %2227 = vmatprep.subr.bf16.mxu1 %v2226_v20  ;;  %v1482_v20 = vld [vmem:[#allocation8 + $0xfd0] sm:$0xff]  ;;  %v2120_v36 = vpack.c.bf16 %v1211_v40, %v1209_v27 }
 0x27d   :  { %2101 = vmatpush1.bf16.msra.mxu0 %v2100_v48  ;;  %v2248_v48 = vpack.c.bf16 %v1482_v20, %v1480_v42 }
 0x27e   :  { %2229 = vmatpush1.bf16.msra.mxu1 %v2228_v55  ;;  %2103 = vmatprep.subr.bf16.mxu0 %v2102_v44  ;;  %v2122_v55 = vpack.c.bf16 %v1216_v46, %v1214_v45  ;;  %v1213_v44 = vld [vmem:[#allocation8 + $0xbe0] sm:$0xff] }
 0x27f   :  { %2231 = vmatprep.subr.bf16.mxu1 %v2230_v23  ;;  %v1486_v23 = vld [vmem:[#allocation8 + $0xff0] sm:$0xff]  ;;  %v2124_v57 = vpack.c.bf16 %v1215_v32, %v1213_v44 }
 0x280   :  { %v2252_v19 = vpack.c.bf16 %v1486_v23, %v1484_v17 }
 0x281   :  { %2105 = vmatpush1.bf16.msra.mxu0 %v2104_v28 }
 0x282   :  { %2233 = vmatpush1.bf16.msra.mxu1 %v2232_v18  ;;  %2107 = vmatprep.subr.bf16.mxu0 %v2106_v56 }
 0x283   :  { %2235 = vmatprep.subr.bf16.mxu1 %v2234_v62 }
 0x285   :  { %2109 = vmatpush1.bf16.msra.mxu0 %v2108_v6  ;;  %v1642_v6 = vld [vmem:[#allocation10] sm:$0x3] }
 0x286   :  { %2237 = vmatpush1.bf16.msra.mxu1 %v2236_v7  ;;  %2111 = vmatprep.subr.bf16.mxu0 %v2110_v52  ;;  %v1651_v14 = vrot.slane %v1642_v6, %v2624_v10  ;;  %v1666_v10 = vld [vmem:[%s2940_s6] sm:$0xff] }
 0x287   :  { %2239 = vmatprep.subr.bf16.mxu1 %v2238_v25 }
 0x289   :  { %2113 = vmatpush1.bf16.msra.mxu0 %v2112_v12 }
 0x28a   :  { %2241 = vmatpush1.bf16.msra.mxu1 %v2240_v53  ;;  %2115 = vmatprep.subr.bf16.mxu0 %v2114_v35  ;;  %v1662_v35 = vld [vmem:[%s2939_s5] sm:$0xff]  ;;  %s2395_s5 = scalar_lea.vmem %s1694_s9, 256 }
 0x28b   :  { %2243 = vmatprep.subr.bf16.mxu1 %v2242_v9  ;;  %p2396_p12 = scmp.ne.s32.totalorder %s1694_s9, %s2395_s5  ;;  %p2401_p0 = scmp.lt.s32.totalorder %s2395_s5, %s2395_s5 }
 0x28d   :  { %2117 = vmatpush1.bf16.msra.mxu0 %v2116_v38  ;;  %p2402_p1 = por %p2401_p0, %p2400_p13 }
 0x28e   :  { %2245 = vmatpush1.bf16.msra.mxu1 %v2244_v34  ;;  %2119 = vmatprep.subr.bf16.mxu0 %v2118_v33 }
 0x28f   :  { %2247 = vmatprep.subr.bf16.mxu1 %v2246_v3  ;;  %p2403_p2 = pnand %p2402_p1, %p2396_p12 }
 0x291   :  { %2121 = vmatpush1.bf16.msra.mxu0 %v2120_v36 }
 0x292   :  { %2249 = vmatpush1.bf16.msra.mxu1 %v2248_v48  ;;  %2123 = vmatprep.subr.bf16.mxu0 %v2122_v55 }
 0x293   :  { %2251 = vmatprep.subr.bf16.mxu1 %v2250_v21 }
 0x295   :  { %2125 = vmatpush1.bf16.msra.mxu0 %v2124_v57 }
 0x296   :  { %2253 = vmatpush1.bf16.msra.mxu1 %v2252_v19 }
 0x298   :  { %1353 = vmatmul.mubr.f32.vlgmr.msra.gmra.mrb[4].mxu0 %v2902_v47 }
 0x299   :  { %1624 = vmatmul.mubr.f32.vlgmr.msra.gmra.mrb[4].mxu1 %v2902_v47  ;;  %v1647_v47 = vrot.slane %v1642_v6, %v2627_v11 }
 0x2eb   :  { %v812_v29 = vpop.f32.mrb[2].mxu0  ;;  %v1083_v26 = vpop.f32.mrb[2].mxu1 }
 0x2ec   :  { %v1630_v51 = vmax.f32 %v812_v29, %v1083_v26  ;;  %v814_v28 = vpop.f32.mrb[3].mxu0  ;;  %v1085_v18 = vpop.f32.mrb[3].mxu1 }
 0x2ed   :  { %v1631_v56 = vmax.f32 %v814_v28, %v1085_v18 }
 0x36b   :  { %v1354_v58 = vpop.f32.mrb[4].mxu0 }
 0x36c   :  { %v1625_v60 = vpop.f32.mrb[4].mxu1  ;;  %v1356_v61 = vpop.f32.mrb[5].mxu0 }
 0x36d   :  { %v1632_v62 = vmax.f32 %v1354_v58, %v1625_v60  ;;  %v1627_v4 = vpop.f32.mrb[5].mxu1 }
 0x36e   :  { %v1633_v49 = vmax.f32 %v1356_v61, %v1627_v4 }
 0x36f   :  { %v1634_v39 = vmax.f32 %v1630_v51, %v1632_v62 }
 0x370   :  { %v1635_v5 = vmax.f32 %v1631_v56, %v1633_v49 }
 0x372   :  { %v1636_v43 = vadd.f32 %v1635_v5, %v1634_v39 }
 0x374   :  { %1637 = vadd.xlane.f32.xlu1 %v1636_v43 }
 0x401   :  { %v1638_v7 = vpop.xlane.xlu1 %1637 }
 0x402   :  { %v1639_v52 = vmul.f32 0.0078125, %v1638_v7 }
 0x404   :  { %v1640_v1 = vsub.f32 %v1634_v39, %v1639_v52  ;;  %v1641_v16 = vsub.f32 %v1635_v5, %v1639_v52 }
 0x406   :  { %v1654_v25 = vmul.f32 %v1647_v47, %v1640_v1  ;;  %v1655_v8 = vmul.f32 %v1651_v14, %v1641_v16 }
 0x408   :  { %v1656_v50 = vmul.f32 %v1654_v25, %v1654_v25  ;;  %v1657_v30 = vmul.f32 %v1655_v8, %v1655_v8 }
 0x40a   :  { %v1658_v41 = vadd.f32 %v1657_v30, %v1656_v50 }
 0x40c   :  { %1659 = vadd.xlane.f32.xlu0 %v1658_v41 }
 0x499   :  { %v1660_v31 = vpop.xlane.xlu0 %1659 }
 0x49a   :  { %v1661_v12 = vmul.f32 0.0078125, %v1660_v31 }
 0x49c   :  { %v1663_v53 = vadd.f32 1e-05, %v1661_v12 }
 0x49e   :  { %2283 = vrsqrt.f32 %v1663_v53 }
 0x4a8   :  { %v2284_v63 = vpop.eup %2283 }
 0x4a9   :  { %v1665_v11 = vmul.f32 %v2284_v63, %v1662_v35 }
 0x4ab   :  { %1671 = vperm.xlu1 %2282, %v1665_v11   ;;  %v1667_v37 = vmul.f32 %v1665_v11, %v1639_v52 }
 0x4ad   :  { %v1668_v15 = vsub.f32 %v1666_v10, %v1667_v37 }
 0x4af   :  { %1678 = vperm.xlu0 %2281, %v1668_v15  }
 0x52a   :  { %v1672_v9 = vpop.permute.xlu1 %1671 }
 0x52b   :  { %v1674_v54 = vmul.f32 %v1672_v9, %v1634_v39  ;;  %v1675_v24 = vmul.f32 %v1672_v9, %v1635_v5 }
 0x52e   :  { %v1679_v22 = vpop.permute.xlu0 %1678 }
 0x52f   :  { %v1681_v0 = vadd.f32 %v1679_v22, %v1674_v54  ;;  %v1682_v2 = vadd.f32 %v1679_v22, %v1675_v24 }
 0x531   :  { %v1683_v38 = vmax.f32 %v1681_v0, 0.0  ;;  %v1684_v34 = vmax.f32 %v1682_v2, 0.0 }
 0x533   :  { %1685 = vst [vmem:[#allocation11] sm:$0xff] %v1683_v38  ;;  %1686 = vst [vmem:[#allocation11 + $0x8] sm:$0xff] %v1684_v34 }
 0x534   :  { %2406 = shalt.err (!%p2403_p2)
}
 0x535   :  { %s2407_s11 = scalar_lea.hbm %s2942_s8, 256 }
 0x536   :  { %p2408_p3 = scmp.ne.s32.totalorder %s2942_s8, %s2407_s11  ;;  %p2411_p4 = scmp.lt.u32.totalorder %s2407_s11, %s2942_s8 }
 0x538   :  { %p2413_p5 = pnand %p2411_p4, %p2408_p3 }
 0x53a   :  { %2416 = shalt.err (!%p2413_p5)
}
 0x53b   :  { %1696 = dma.vmem_to_hbm [thread:$0]  %s1694_s9, 256, %s2942_s8, [#allocation4]  }
 0x53c   :  { %2423 = dma.done.wait [#allocation4], 256  }
 0x53d   :  { %2424 = vsyncadd [#allocation4], 4294967040 }
 0x53e   :  { %1700 = vsyncpa [#allocation3], 1 }
 0x53f   :  { %1701 = vsyncpa [#allocation6], 1 }
 0x540   :  { %1702 = vsyncpa [#allocation9], 1 }
 0x541   :  { %1703 = vsyncpa [#allocation4], 1 }

</bundles_post_ra>
